<compile_context>
chip_gen: v7x
topology: tpu7x:2x2x1
jax: 0.10.0
libtpu: 0.0.40
codegen_flags: <defaults>
</compile_context>

<pallas_src>
import functools

import jax
import jax.numpy as jnp
from jax import lax
from jax.experimental import pallas as pl
from jax.experimental.pallas import tpu as pltpu
import numpy as np


def _round_up(v, m):
    return (v + m - 1) // m * m


def _vmem_limit_bytes():
    """Generation-dependent VMEM limit: ~3/4 of physical (48 MiB on v7x's 64 MiB,
    96 MiB on v5e/v6e's 128 MiB); conservative 48 MiB fallback if the query fails."""
    try:
        phys = getattr(pltpu.get_tpu_info(), "vmem_capacity_bytes", None)
    except Exception:
        phys = None
    if not phys:
        phys = 64 * 1024 * 1024
    return int(min(phys * 3 // 4, 96 * 1024 * 1024))


def _pick_h_tile(N, H, W, Ck, C4, vmem_limit):
    """h-tile (multiple of 8).  Grown toward ~4k matmul rows/step (amortizes the
    ~0.35us per-step overhead) while the double-buffered operands + f32 accumulator
    stay inside the VMEM budget; keeps >= 2 grid steps for v7x megacore."""
    W2 = W + 2
    H8 = _round_up(max(H, 1), 8)
    th = min(H8, max(8, (4096 // W2) // 8 * 8))
    budget = vmem_limit * 3 // 4

    def footprint(t):
        rows = t * W2
        slab = ((t + 2) * W2 + 8) * Ck * 2       # haloed bf16 input slab
        wall = 9 * Ck * C4 * 2                   # packed taps (bf16)
        yout = rows * C4 * 2                     # bf16 Y tile
        stats = 2 * 8 * C4 * 4
        maskb = rows * 4
        acc = rows * C4 * 4                      # in-kernel f32 accumulator
        # Pipelined operands are double-buffered (incl. the constant-index Wall).
        # TODO(synk): single-buffer the Wall block with pipeline_mode=pl.Buffered(1).
        return 2 * (slab + wall + yout + stats + maskb) + acc

    while th > 8 and footprint(th) > budget:
        th = max(8, _round_up(th // 2, 8))
    if footprint(th) > budget:
        # The resident weight term is th-independent; fail loudly instead of
        # overflowing VMEM at compile time.
        # TODO(synk): add a C4 (and K) grid axis for very large Cin*Cout (v7x).
        raise ValueError("Up Pallas kernel: per-step working set does not fit VMEM; "
                         "a C4/K-tiled variant is required for these channel counts.")
    if N * pl.cdiv(H, th) < 2 and th > 8:        # v7x megacore: >= 2 grid steps
        th = max(8, _round_up(pl.cdiv(H, 2), 8))
    return th


def _make_convt_stats_kernel(w2):
    """Pass 1: in-VMEM im2col (9 row-shifted views of the haloed slab) -> 9
    accumulated MXU matmuls -> bf16 Y tile + masked per-tile partial sums /
    sums-of-squares for the BatchNorm batch statistics."""
    def kernel(x_ref, w_ref, m_ref, y_ref, sum_ref, sq_ref):
        rows = y_ref.shape[0]
        acc = jnp.zeros(y_ref.shape, jnp.float32)
        for dy in range(3):
            for dx in range(3):
                off = dy * 3 + dx
                lhs = x_ref[pl.ds(dy * w2 + dx, rows), :]     # (rows, Ck) bf16
                acc = acc + jnp.dot(lhs, w_ref[off],
                                    preferred_element_type=jnp.float32)
        mask = m_ref[...]                                     # (rows, 1) f32
        ym = acc * mask                                       # junk / pad rows -> 0
        # 8 sublane-parallel partial accumulators: better numerics + (8, C4) store.
        sum_ref[...] = jnp.sum(ym.reshape(rows // 8, 8, -1), axis=0)
        sq_ref[...] = jnp.sum((ym * acc).reshape(rows // 8, 8, -1), axis=0)
        y_ref[...] = acc.astype(y_ref.dtype)
    return kernel


def _bn_apply_kernel(y_ref, sc_ref, sh_ref, o_ref):
    """Pass 2: pure-VPU BatchNorm affine apply over the bf16 activation."""
    y = y_ref[...].astype(jnp.float32)
    o_ref[...] = (y * sc_ref[...] + sh_ref[...]).astype(o_ref.dtype)


def up_forward(x, weight, bias, gamma, beta, eps=1e-5):
    """x: (N, Cin, H, W) f32 -> (N, Cout, 2H, 2W) f32.

    ConvTranspose2d(Cin, Cout, 4, stride=2, padding=1) + BatchNorm2d in training
    mode (biased batch variance).  The ConvTranspose bias cancels exactly under
    training-mode BatchNorm and is dropped.  bf16 MXU math (~1e-2 accuracy)."""
    del bias
    N, Cin, H, W = x.shape
    Cout = weight.shape[1]
    Cout_p = _round_up(Cout, 32)        # 4*Cout_p % 128 == 0 -> lane-dense columns
    C4 = 4 * Cout_p
    Ck = _round_up(Cin, 8)              # sublane-aligned contraction dim
    W2 = W + 2

    vmem_limit = _vmem_limit_bytes()
    th = _pick_h_tile(N, H, W, Ck, C4, vmem_limit)
    n_h = pl.cdiv(H, th)
    H_pad = n_h * th
    n_tiles = N * n_h
    rows = th * W2                      # matmul rows per step (2 junk cols per image row)
    slab_rows = (th + 2) * W2 + 8       # +8 zero tail keeps the farthest-shifted tap's
                                        # window in bounds (its tail lands on junk rows)

    # ---- glue: haloed, zero-padded NHWC bf16 slabs (the only input-side HBM
    # intermediate, ~1.1x the input) ----
    x_nhwc = jnp.transpose(x.astype(jnp.bfloat16), (0, 2, 3, 1))
    xpn = jnp.pad(x_nhwc, ((0, 0), (1, 1 + H_pad - H), (1, 1), (0, Ck - Cin)))
    slabs = jnp.concatenate(
        [xpn[:, i * th:i * th + th + 2][:, None] for i in range(n_h)], axis=1)
    xh = slabs.reshape(n_tiles, (th + 2) * W2, Ck)
    xh = jnp.pad(xh, ((0, 0), (0, slab_rows - (th + 2) * W2), (0, 0)))

    # ---- glue: phase-packed taps W9[off, ci, (2a+b)*Cout_p + co] (bf16) ----
    # out[n,co,2h+a,2w+b] = sum_{ci,dy,dx} xpad[n,h+dy,w+dx,ci] * W[ci,co,a+3-2dy,b+3-2dx]
    W9 = jnp.zeros((9, Ck, C4), jnp.float32)
    for a in (0, 1):
        for b in (0, 1):
            for dy in range(3):
                for dx in range(3):
                    ky, kx = a + 3 - 2 * dy, b + 3 - 2 * dx
                    if 0 <= ky < 4 and 0 <= kx < 4:
                        off = dy * 3 + dx
                        cs = (2 * a + b) * Cout_p
                        W9 = W9.at[off, :Cin, cs:cs + Cout].set(weight[:, :, ky, kx])
    W9 = W9.astype(jnp.bfloat16)

    # ---- glue: static per-tile validity mask (drops the 2 junk columns per image
    # row and the h >= H padding rows from the batch statistics) ----
    w_ok = (np.arange(W2) < W).astype(np.float32)
    mtiles = np.zeros((n_h, th, W2), np.float32)
    for i in range(n_h):
        h_ok = ((i * th + np.arange(th)) < H).astype(np.float32)
        mtiles[i] = h_ok[:, None] * w_ok[None, :]
    mask = jnp.asarray(
        np.tile(mtiles.reshape(1, n_h, th, W2), (N, 1, 1, 1)).reshape(n_tiles, rows, 1))

    cparams = pltpu.CompilerParams(dimension_semantics=("parallel",),
                                   vmem_limit_bytes=vmem_limit)

    # ---- pass 1: transposed conv (single MXU pass) -> bf16 Y + partial stats ----
    yraw, sums, sqs = pl.pallas_call(
        _make_convt_stats_kernel(W2),
        out_shape=(jax.ShapeDtypeStruct((n_tiles, rows, C4), jnp.bfloat16),
                   jax.ShapeDtypeStruct((n_tiles, 8, C4), jnp.float32),
                   jax.ShapeDtypeStruct((n_tiles, 8, C4), jnp.float32)),
        grid=(n_tiles,),
        in_specs=[pl.BlockSpec((None, slab_rows, Ck), lambda i: (i, 0, 0)),
                  pl.BlockSpec((9, Ck, C4), lambda i: (0, 0, 0)),
                  pl.BlockSpec((None, rows, 1), lambda i: (i, 0, 0))],
        out_specs=(pl.BlockSpec((None, rows, C4), lambda i: (i, 0, 0)),
                   pl.BlockSpec((None, 8, C4), lambda i: (i, 0, 0)),
                   pl.BlockSpec((None, 8, C4), lambda i: (i, 0, 0))),
        compiler_params=cparams,
    )(xh, W9, mask)

    # ---- glue: finalize training-mode BatchNorm statistics (biased variance) ----
    count = 4.0 * N * H * W
    ch_sum = jnp.sum(sums, axis=(0, 1)).reshape(4, Cout_p).sum(0)
    ch_sq = jnp.sum(sqs, axis=(0, 1)).reshape(4, Cout_p).sum(0)
    mean = ch_sum / count
    # NOTE: E[y^2]-E[y]^2 in f32; the per-tile 8-sublane partials limit cancellation.
    var = jnp.maximum(ch_sq / count - mean * mean, 0.0)
    gamma_p = jnp.zeros((Cout_p,), jnp.float32).at[:Cout].set(gamma)
    beta_p = jnp.zeros((Cout_p,), jnp.float32).at[:Cout].set(beta)
    scale = gamma_p * lax.rsqrt(var + eps)
    shift = beta_p - mean * scale
    sc_cols = jnp.tile(scale, 4)[None, :]
    sh_cols = jnp.tile(shift, 4)[None, :]

    # ---- pass 2: pure-VPU scale/shift over bf16 Y (no matmul recompute) ----
    yn = pl.pallas_call(
        _bn_apply_kernel,
        out_shape=jax.ShapeDtypeStruct((n_tiles, rows, C4), jnp.bfloat16),
        grid=(n_tiles,),
        in_specs=[pl.BlockSpec((None, rows, C4), lambda i: (i, 0, 0)),
                  pl.BlockSpec((1, C4), lambda i: (0, 0)),
                  pl.BlockSpec((1, C4), lambda i: (0, 0))],
        out_specs=pl.BlockSpec((None, rows, C4), lambda i: (i, 0, 0)),
        compiler_params=cparams,
    )(yraw, sc_cols, sh_cols)

    # ---- glue: (n_tiles, rows, C4) -> NCHW; slice to the valid H/W/Cout BEFORE the
    # phase-interleave transpose (bf16 read), convert to f32 at the end ----
    # TODO(synk): write the 2x2 phase interleave / NCHW layout directly from pass 2
    # (needs a minor->major in-kernel transpose) to drop this XLA transpose pass.
    out = yn.reshape(N, H_pad, W2, 4, Cout_p)[:, :H, :W, :, :Cout]
    out = out.reshape(N, H, W, 2, 2, Cout).transpose(0, 5, 1, 3, 2, 4)
    return out.reshape(N, Cout, 2 * H, 2 * W).astype(jnp.float32)


def up_reference(x, weight, bias, gamma, beta, eps=1e-5):
    """Pure-JAX reference matching PyTorch ConvTranspose2d + BatchNorm2d (training)."""
    Wf = jnp.transpose(weight, (1, 0, 2, 3))[:, :, ::-1, ::-1]
    y = lax.conv_general_dilated(
        x, Wf, window_strides=(1, 1), padding=[(2, 2), (2, 2)],
        lhs_dilation=(2, 2), dimension_numbers=('NCHW', 'OIHW', 'NCHW'))
    y = y + bias[None, :, None, None]
    mean = y.mean(axis=(0, 2, 3), keepdims=True)
    var = ((y - mean) ** 2).mean(axis=(0, 2, 3), keepdims=True)
    return ((y - mean) / jnp.sqrt(var + eps)) * gamma[None, :, None, None] \
        + beta[None, :, None, None]


if __name__ == "__main__":
    N, Cin, Cout, H, W = 2, 4, 8, 16, 16

    key = jax.random.PRNGKey(0)
    kx, kw, kb, kg, kbe = jax.random.split(key, 5)
    x = jax.random.normal(kx, (N, Cin, H, W), jnp.float32)
    # ConvTranspose2d weight shape: (in_channels, out_channels, kH, kW)
    weight = 0.2 * jax.random.normal(kw, (Cin, Cout, 4, 4), jnp.float32)
    bias = 0.1 * jax.random.normal(kb, (Cout,), jnp.float32)
    gamma = 1.0 + 0.1 * jax.random.normal(kg, (Cout,), jnp.float32)
    beta = 0.1 * jax.random.normal(kbe, (Cout,), jnp.float32)

    up_fn = jax.jit(up_forward)

    # Case 1: H divides the h-tile exactly.
    out = jax.block_until_ready(up_fn(x, weight, bias, gamma, beta))
    ref = up_reference(x, weight, bias, gamma, beta)
    np.testing.assert_allclose(np.asarray(out), np.asarray(ref), rtol=2e-2, atol=2e-2)

    # Case 2: ragged H/W (20x20) — exercises the h-padding rows, the per-tile
    # validity mask in the statistics, and the junk-column handling.
    x2 = jax.random.normal(kx, (2, Cin, 20, 20), jnp.float32)
    out2 = jax.block_until_ready(up_fn(x2, weight, bias, gamma, beta))
    ref2 = up_reference(x2, weight, bias, gamma, beta)
    np.testing.assert_allclose(np.asarray(out2), np.asarray(ref2), rtol=2e-2, atol=2e-2)

    print("KERNEL_OK")
</pallas_src>

<mosaic_0001>
module attributes {stable_mosaic.version = 11 : i64} {
  func.func @kernel(%arg0: i32, %arg1: memref<1x332x8xbf16, #tpu.memory_space<vmem>>, %arg2: memref<9x8x128xbf16, #tpu.memory_space<vmem>>, %arg3: memref<1x288x1xf32, #tpu.memory_space<vmem>>, %arg4: memref<1x288x128xbf16, #tpu.memory_space<vmem>>, %arg5: memref<1x8x128xf32, #tpu.memory_space<vmem>>, %arg6: memref<1x8x128xf32, #tpu.memory_space<vmem>>) attributes {dimension_semantics = [#tpu.dimension_semantics<parallel>], iteration_bounds = array<i64: 2>, scalar_prefetch = 0 : i64, scratch_operands = 0 : i64, tpu.core_type = #tpu.core_type<tc>, window_params = [{transform_indices = @transform_0, window_bounds = array<i64: 1, 332, 8>}, {pipeline_mode = #tpu.pipeline_mode<synchronous>, transform_indices = @transform_1, window_bounds = array<i64: 9, 8, 128>}, {transform_indices = @transform_2, window_bounds = array<i64: 1, 288, 1>}, {transform_indices = @transform_3, window_bounds = array<i64: 1, 288, 128>}, {transform_indices = @transform_4, window_bounds = array<i64: 1, 8, 128>}, {transform_indices = @transform_5, window_bounds = array<i64: 1, 8, 128>}]} {
    %cst = arith.constant 0.000000e+00 : f32
    %0 = vector.broadcast %cst : f32 to vector<288x128xf32>
    %c0 = arith.constant 0 : index
    %c0_0 = arith.constant 0 : index
    %c0_1 = arith.constant 0 : index
    %1 = vector.load %arg1[%c0, %c0_0, %c0_1] : memref<1x332x8xbf16, #tpu.memory_space<vmem>>, vector<1x288x8xbf16>
    %2 = vector.shape_cast %1 : vector<1x288x8xbf16> to vector<288x8xbf16>
    %c0_2 = arith.constant 0 : index
    %c0_3 = arith.constant 0 : index
    %c0_4 = arith.constant 0 : index
    %3 = vector.load %arg2[%c0_2, %c0_3, %c0_4] : memref<9x8x128xbf16, #tpu.memory_space<vmem>>, vector<1x8x128xbf16>
    %4 = vector.shape_cast %3 : vector<1x8x128xbf16> to vector<8x128xbf16>
    %cst_5 = arith.constant dense<0.000000e+00> : vector<288x128xf32>
    %5 = tpu.matmul %2, %4, %cst_5 {dimension_numbers = #tpu.dot_dimension_numbers<[1], [0], [0], [1], [0, 0, 1, 1], [], []>} : vector<288x8xbf16>, vector<8x128xbf16>, vector<288x128xf32> -> vector<288x128xf32>
    %6 = arith.addf %0, %5 : vector<288x128xf32>
    %c0_6 = arith.constant 0 : index
    %c1 = arith.constant 1 : index
    %c0_7 = arith.constant 0 : index
    %7 = vector.load %arg1[%c0_6, %c1, %c0_7] : memref<1x332x8xbf16, #tpu.memory_space<vmem>>, vector<1x288x8xbf16>
    %8 = vector.shape_cast %7 : vector<1x288x8xbf16> to vector<288x8xbf16>
    %c1_8 = arith.constant 1 : index
    %c0_9 = arith.constant 0 : index
    %c0_10 = arith.constant 0 : index
    %9 = vector.load %arg2[%c1_8, %c0_9, %c0_10] : memref<9x8x128xbf16, #tpu.memory_space<vmem>>, vector<1x8x128xbf16>
    %10 = vector.shape_cast %9 : vector<1x8x128xbf16> to vector<8x128xbf16>
    %cst_11 = arith.constant dense<0.000000e+00> : vector<288x128xf32>
    %11 = tpu.matmul %8, %10, %cst_11 {dimension_numbers = #tpu.dot_dimension_numbers<[1], [0], [0], [1], [0, 0, 1, 1], [], []>} : vector<288x8xbf16>, vector<8x128xbf16>, vector<288x128xf32> -> vector<288x128xf32>
    %12 = arith.addf %6, %11 : vector<288x128xf32>
    %c0_12 = arith.constant 0 : index
    %c2 = arith.constant 2 : index
    %c0_13 = arith.constant 0 : index
    %13 = vector.load %arg1[%c0_12, %c2, %c0_13] : memref<1x332x8xbf16, #tpu.memory_space<vmem>>, vector<1x288x8xbf16>
    %14 = vector.shape_cast %13 : vector<1x288x8xbf16> to vector<288x8xbf16>
    %c2_14 = arith.constant 2 : index
    %c0_15 = arith.constant 0 : index
    %c0_16 = arith.constant 0 : index
    %15 = vector.load %arg2[%c2_14, %c0_15, %c0_16] : memref<9x8x128xbf16, #tpu.memory_space<vmem>>, vector<1x8x128xbf16>
    %16 = vector.shape_cast %15 : vector<1x8x128xbf16> to vector<8x128xbf16>
    %cst_17 = arith.constant dense<0.000000e+00> : vector<288x128xf32>
    %17 = tpu.matmul %14, %16, %cst_17 {dimension_numbers = #tpu.dot_dimension_numbers<[1], [0], [0], [1], [0, 0, 1, 1], [], []>} : vector<288x8xbf16>, vector<8x128xbf16>, vector<288x128xf32> -> vector<288x128xf32>
    %18 = arith.addf %12, %17 : vector<288x128xf32>
    %c0_18 = arith.constant 0 : index
    %c18 = arith.constant 18 : index
    %c0_19 = arith.constant 0 : index
    %19 = vector.load %arg1[%c0_18, %c18, %c0_19] : memref<1x332x8xbf16, #tpu.memory_space<vmem>>, vector<1x288x8xbf16>
    %20 = vector.shape_cast %19 : vector<1x288x8xbf16> to vector<288x8xbf16>
    %c3 = arith.constant 3 : index
    %c0_20 = arith.constant 0 : index
    %c0_21 = arith.constant 0 : index
    %21 = vector.load %arg2[%c3, %c0_20, %c0_21] : memref<9x8x128xbf16, #tpu.memory_space<vmem>>, vector<1x8x128xbf16>
    %22 = vector.shape_cast %21 : vector<1x8x128xbf16> to vector<8x128xbf16>
    %cst_22 = arith.constant dense<0.000000e+00> : vector<288x128xf32>
    %23 = tpu.matmul %20, %22, %cst_22 {dimension_numbers = #tpu.dot_dimension_numbers<[1], [0], [0], [1], [0, 0, 1, 1], [], []>} : vector<288x8xbf16>, vector<8x128xbf16>, vector<288x128xf32> -> vector<288x128xf32>
    %24 = arith.addf %18, %23 : vector<288x128xf32>
    %c0_23 = arith.constant 0 : index
    %c19 = arith.constant 19 : index
    %c0_24 = arith.constant 0 : index
    %25 = vector.load %arg1[%c0_23, %c19, %c0_24] : memref<1x332x8xbf16, #tpu.memory_space<vmem>>, vector<1x288x8xbf16>
    %26 = vector.shape_cast %25 : vector<1x288x8xbf16> to vector<288x8xbf16>
    %c4 = arith.constant 4 : index
    %c0_25 = arith.constant 0 : index
    %c0_26 = arith.constant 0 : index
    %27 = vector.load %arg2[%c4, %c0_25, %c0_26] : memref<9x8x128xbf16, #tpu.memory_space<vmem>>, vector<1x8x128xbf16>
    %28 = vector.shape_cast %27 : vector<1x8x128xbf16> to vector<8x128xbf16>
    %cst_27 = arith.constant dense<0.000000e+00> : vector<288x128xf32>
    %29 = tpu.matmul %26, %28, %cst_27 {dimension_numbers = #tpu.dot_dimension_numbers<[1], [0], [0], [1], [0, 0, 1, 1], [], []>} : vector<288x8xbf16>, vector<8x128xbf16>, vector<288x128xf32> -> vector<288x128xf32>
    %30 = arith.addf %24, %29 : vector<288x128xf32>
    %c0_28 = arith.constant 0 : index
    %c20 = arith.constant 20 : index
    %c0_29 = arith.constant 0 : index
    %31 = vector.load %arg1[%c0_28, %c20, %c0_29] : memref<1x332x8xbf16, #tpu.memory_space<vmem>>, vector<1x288x8xbf16>
    %32 = vector.shape_cast %31 : vector<1x288x8xbf16> to vector<288x8xbf16>
    %c5 = arith.constant 5 : index
    %c0_30 = arith.constant 0 : index
    %c0_31 = arith.constant 0 : index
    %33 = vector.load %arg2[%c5, %c0_30, %c0_31] : memref<9x8x128xbf16, #tpu.memory_space<vmem>>, vector<1x8x128xbf16>
    %34 = vector.shape_cast %33 : vector<1x8x128xbf16> to vector<8x128xbf16>
    %cst_32 = arith.constant dense<0.000000e+00> : vector<288x128xf32>
    %35 = tpu.matmul %32, %34, %cst_32 {dimension_numbers = #tpu.dot_dimension_numbers<[1], [0], [0], [1], [0, 0, 1, 1], [], []>} : vector<288x8xbf16>, vector<8x128xbf16>, vector<288x128xf32> -> vector<288x128xf32>
    %36 = arith.addf %30, %35 : vector<288x128xf32>
    %c0_33 = arith.constant 0 : index
    %c36 = arith.constant 36 : index
    %c0_34 = arith.constant 0 : index
    %37 = vector.load %arg1[%c0_33, %c36, %c0_34] : memref<1x332x8xbf16, #tpu.memory_space<vmem>>, vector<1x288x8xbf16>
    %38 = vector.shape_cast %37 : vector<1x288x8xbf16> to vector<288x8xbf16>
    %c6 = arith.constant 6 : index
    %c0_35 = arith.constant 0 : index
    %c0_36 = arith.constant 0 : index
    %39 = vector.load %arg2[%c6, %c0_35, %c0_36] : memref<9x8x128xbf16, #tpu.memory_space<vmem>>, vector<1x8x128xbf16>
    %40 = vector.shape_cast %39 : vector<1x8x128xbf16> to vector<8x128xbf16>
    %cst_37 = arith.constant dense<0.000000e+00> : vector<288x128xf32>
    %41 = tpu.matmul %38, %40, %cst_37 {dimension_numbers = #tpu.dot_dimension_numbers<[1], [0], [0], [1], [0, 0, 1, 1], [], []>} : vector<288x8xbf16>, vector<8x128xbf16>, vector<288x128xf32> -> vector<288x128xf32>
    %42 = arith.addf %36, %41 : vector<288x128xf32>
    %c0_38 = arith.constant 0 : index
    %c37 = arith.constant 37 : index
    %c0_39 = arith.constant 0 : index
    %43 = vector.load %arg1[%c0_38, %c37, %c0_39] : memref<1x332x8xbf16, #tpu.memory_space<vmem>>, vector<1x288x8xbf16>
    %44 = vector.shape_cast %43 : vector<1x288x8xbf16> to vector<288x8xbf16>
    %c7 = arith.constant 7 : index
    %c0_40 = arith.constant 0 : index
    %c0_41 = arith.constant 0 : index
    %45 = vector.load %arg2[%c7, %c0_40, %c0_41] : memref<9x8x128xbf16, #tpu.memory_space<vmem>>, vector<1x8x128xbf16>
    %46 = vector.shape_cast %45 : vector<1x8x128xbf16> to vector<8x128xbf16>
    %cst_42 = arith.constant dense<0.000000e+00> : vector<288x128xf32>
    %47 = tpu.matmul %44, %46, %cst_42 {dimension_numbers = #tpu.dot_dimension_numbers<[1], [0], [0], [1], [0, 0, 1, 1], [], []>} : vector<288x8xbf16>, vector<8x128xbf16>, vector<288x128xf32> -> vector<288x128xf32>
    %48 = arith.addf %42, %47 : vector<288x128xf32>
    %c0_43 = arith.constant 0 : index
    %c38 = arith.constant 38 : index
    %c0_44 = arith.constant 0 : index
    %49 = vector.load %arg1[%c0_43, %c38, %c0_44] : memref<1x332x8xbf16, #tpu.memory_space<vmem>>, vector<1x288x8xbf16>
    %50 = vector.shape_cast %49 : vector<1x288x8xbf16> to vector<288x8xbf16>
    %c8 = arith.constant 8 : index
    %c0_45 = arith.constant 0 : index
    %c0_46 = arith.constant 0 : index
    %51 = vector.load %arg2[%c8, %c0_45, %c0_46] : memref<9x8x128xbf16, #tpu.memory_space<vmem>>, vector<1x8x128xbf16>
    %52 = vector.shape_cast %51 : vector<1x8x128xbf16> to vector<8x128xbf16>
    %cst_47 = arith.constant dense<0.000000e+00> : vector<288x128xf32>
    %53 = tpu.matmul %50, %52, %cst_47 {dimension_numbers = #tpu.dot_dimension_numbers<[1], [0], [0], [1], [0, 0, 1, 1], [], []>} : vector<288x8xbf16>, vector<8x128xbf16>, vector<288x128xf32> -> vector<288x128xf32>
    %54 = arith.addf %48, %53 : vector<288x128xf32>
    %c0_48 = arith.constant 0 : index
    %c0_49 = arith.constant 0 : index
    %c0_50 = arith.constant 0 : index
    %55 = vector.load %arg3[%c0_48, %c0_49, %c0_50] : memref<1x288x1xf32, #tpu.memory_space<vmem>>, vector<1x288x1xf32>
    %56 = vector.shape_cast %55 : vector<1x288x1xf32> to vector<288x1xf32>
    %57 = vector.broadcast %56 : vector<288x1xf32> to vector<288x128xf32>
    %58 = arith.mulf %54, %57 : vector<288x128xf32>
    %59 = vector.shape_cast %58 : vector<288x128xf32> to vector<36x8x128xf32>
    %cst_51 = arith.constant dense<0.000000e+00> : vector<8x128xf32>
    %60 = vector.multi_reduction <add>, %59, %cst_51 [0] : vector<36x8x128xf32> to vector<8x128xf32>
    %c0_52 = arith.constant 0 : index
    %c0_53 = arith.constant 0 : index
    %c0_54 = arith.constant 0 : index
    %61 = vector.load %arg5[%c0_52, %c0_53, %c0_54] : memref<1x8x128xf32, #tpu.memory_space<vmem>>, vector<1x8x128xf32>
    %62 = vector.shape_cast %61 : vector<1x8x128xf32> to vector<8x128xf32>
    %63 = vector.shape_cast %60 : vector<8x128xf32> to vector<1x8x128xf32>
    tpu.vector_store %arg5[%c0_52, %c0_53, %c0_54], %63 {strides = array<i32>} : memref<1x8x128xf32, #tpu.memory_space<vmem>>, vector<1x8x128xf32>,
    %64 = arith.mulf %58, %54 : vector<288x128xf32>
    %65 = vector.shape_cast %64 : vector<288x128xf32> to vector<36x8x128xf32>
    %cst_55 = arith.constant dense<0.000000e+00> : vector<8x128xf32>
    %66 = vector.multi_reduction <add>, %65, %cst_55 [0] : vector<36x8x128xf32> to vector<8x128xf32>
    %c0_56 = arith.constant 0 : index
    %c0_57 = arith.constant 0 : index
    %c0_58 = arith.constant 0 : index
    %67 = vector.load %arg6[%c0_56, %c0_57, %c0_58] : memref<1x8x128xf32, #tpu.memory_space<vmem>>, vector<1x8x128xf32>
    %68 = vector.shape_cast %67 : vector<1x8x128xf32> to vector<8x128xf32>
    %69 = vector.shape_cast %66 : vector<8x128xf32> to vector<1x8x128xf32>
    tpu.vector_store %arg6[%c0_56, %c0_57, %c0_58], %69 {strides = array<i32>} : memref<1x8x128xf32, #tpu.memory_space<vmem>>, vector<1x8x128xf32>,
    %70 = arith.truncf %54 : vector<288x128xf32> to vector<288x128xbf16>
    %c0_59 = arith.constant 0 : index
    %c0_60 = arith.constant 0 : index
    %c0_61 = arith.constant 0 : index
    %71 = vector.load %arg4[%c0_59, %c0_60, %c0_61] : memref<1x288x128xbf16, #tpu.memory_space<vmem>>, vector<1x288x128xbf16>
    %72 = vector.shape_cast %71 : vector<1x288x128xbf16> to vector<288x128xbf16>
    %73 = vector.shape_cast %70 : vector<288x128xbf16> to vector<1x288x128xbf16>
    tpu.vector_store %arg4[%c0_59, %c0_60, %c0_61], %73 {strides = array<i32>} : memref<1x288x128xbf16, #tpu.memory_space<vmem>>, vector<1x288x128xbf16>,
    return
  }
  func.func @transform_0(%arg0: i32) -> (i32, i32, i32) {
    %c0_i32 = arith.constant 0 : i32
    %c0_i32_0 = arith.constant 0 : i32
    %c0_i32_1 = arith.constant 0 : i32
    return %arg0, %c0_i32, %c0_i32_0 : i32, i32, i32
  }
  func.func @transform_1(%arg0: i32) -> (i32, i32, i32) {
    %c0_i32 = arith.constant 0 : i32
    %c0_i32_0 = arith.constant 0 : i32
    %c0_i32_1 = arith.constant 0 : i32
    %c0_i32_2 = arith.constant 0 : i32
    return %c0_i32, %c0_i32_0, %c0_i32_1 : i32, i32, i32
  }
  func.func @transform_2(%arg0: i32) -> (i32, i32, i32) {
    %c0_i32 = arith.constant 0 : i32
    %c0_i32_0 = arith.constant 0 : i32
    %c0_i32_1 = arith.constant 0 : i32
    return %arg0, %c0_i32, %c0_i32_0 : i32, i32, i32
  }
  func.func @transform_3(%arg0: i32) -> (i32, i32, i32) {
    %c0_i32 = arith.constant 0 : i32
    %c0_i32_0 = arith.constant 0 : i32
    %c0_i32_1 = arith.constant 0 : i32
    return %arg0, %c0_i32, %c0_i32_0 : i32, i32, i32
  }
  func.func @transform_4(%arg0: i32) -> (i32, i32, i32) {
    %c0_i32 = arith.constant 0 : i32
    %c0_i32_0 = arith.constant 0 : i32
    %c0_i32_1 = arith.constant 0 : i32
    return %arg0, %c0_i32, %c0_i32_0 : i32, i32, i32
  }
  func.func @transform_5(%arg0: i32) -> (i32, i32, i32) {
    %c0_i32 = arith.constant 0 : i32
    %c0_i32_0 = arith.constant 0 : i32
    %c0_i32_1 = arith.constant 0 : i32
    return %arg0, %c0_i32, %c0_i32_0 : i32, i32, i32
  }
}

module attributes {stable_mosaic.version = 11 : i64} {
  func.func @_bn_apply_kernel(%arg0: i32, %arg1: memref<1x288x128xbf16, #tpu.memory_space<vmem>>, %arg2: memref<1x128xf32, #tpu.memory_space<vmem>>, %arg3: memref<1x128xf32, #tpu.memory_space<vmem>>, %arg4: memref<1x288x128xbf16, #tpu.memory_space<vmem>>) attributes {dimension_semantics = [#tpu.dimension_semantics<parallel>], iteration_bounds = array<i64: 2>, scalar_prefetch = 0 : i64, scratch_operands = 0 : i64, tpu.core_type = #tpu.core_type<tc>, window_params = [{transform_indices = @transform_0, window_bounds = array<i64: 1, 288, 128>}, {pipeline_mode = #tpu.pipeline_mode<synchronous>, transform_indices = @transform_1, window_bounds = array<i64: 1, 128>}, {pipeline_mode = #tpu.pipeline_mode<synchronous>, transform_indices = @transform_2, window_bounds = array<i64: 1, 128>}, {transform_indices = @transform_3, window_bounds = array<i64: 1, 288, 128>}]} {
    %c0 = arith.constant 0 : index
    %c0_0 = arith.constant 0 : index
    %c0_1 = arith.constant 0 : index
    %0 = vector.load %arg1[%c0, %c0_0, %c0_1] : memref<1x288x128xbf16, #tpu.memory_space<vmem>>, vector<1x288x128xbf16>
    %1 = vector.shape_cast %0 : vector<1x288x128xbf16> to vector<288x128xbf16>
    %2 = arith.extf %1 : vector<288x128xbf16> to vector<288x128xf32>
    %c0_2 = arith.constant 0 : index
    %c0_3 = arith.constant 0 : index
    %3 = vector.load %arg2[%c0_2, %c0_3] : memref<1x128xf32, #tpu.memory_space<vmem>>, vector<1x128xf32>
    %4 = vector.broadcast %3 : vector<1x128xf32> to vector<288x128xf32>
    %5 = arith.mulf %2, %4 : vector<288x128xf32>
    %c0_4 = arith.constant 0 : index
    %c0_5 = arith.constant 0 : index
    %6 = vector.load %arg3[%c0_4, %c0_5] : memref<1x128xf32, #tpu.memory_space<vmem>>, vector<1x128xf32>
    %7 = vector.broadcast %6 : vector<1x128xf32> to vector<288x128xf32>
    %8 = arith.addf %5, %7 : vector<288x128xf32>
    %9 = arith.truncf %8 : vector<288x128xf32> to vector<288x128xbf16>
    %c0_6 = arith.constant 0 : index
    %c0_7 = arith.constant 0 : index
    %c0_8 = arith.constant 0 : index
    %10 = vector.load %arg4[%c0_6, %c0_7, %c0_8] : memref<1x288x128xbf16, #tpu.memory_space<vmem>>, vector<1x288x128xbf16>
    %11 = vector.shape_cast %10 : vector<1x288x128xbf16> to vector<288x128xbf16>
    %12 = vector.shape_cast %9 : vector<288x128xbf16> to vector<1x288x128xbf16>
    tpu.vector_store %arg4[%c0_6, %c0_7, %c0_8], %12 {strides = array<i32>} : memref<1x288x128xbf16, #tpu.memory_space<vmem>>, vector<1x288x128xbf16>,
    return
  }
  func.func @transform_0(%arg0: i32) -> (i32, i32, i32) {
    %c0_i32 = arith.constant 0 : i32
    %c0_i32_0 = arith.constant 0 : i32
    %c0_i32_1 = arith.constant 0 : i32
    return %arg0, %c0_i32, %c0_i32_0 : i32, i32, i32
  }
  func.func @transform_1(%arg0: i32) -> (i32, i32) {
    %c0_i32 = arith.constant 0 : i32
    %c0_i32_0 = arith.constant 0 : i32
    %c0_i32_1 = arith.constant 0 : i32
    return %c0_i32, %c0_i32_0 : i32, i32
  }
  func.func @transform_2(%arg0: i32) -> (i32, i32) {
    %c0_i32 = arith.constant 0 : i32
    %c0_i32_0 = arith.constant 0 : i32
    %c0_i32_1 = arith.constant 0 : i32
    return %c0_i32, %c0_i32_0 : i32, i32
  }
  func.func @transform_3(%arg0: i32) -> (i32, i32, i32) {
    %c0_i32 = arith.constant 0 : i32
    %c0_i32_0 = arith.constant 0 : i32
    %c0_i32_1 = arith.constant 0 : i32
    return %arg0, %c0_i32, %c0_i32_0 : i32, i32, i32
  }
}

</mosaic_0001>

<bundles_post_ra>
// kernel: tile.18
= control target key start
LH: loop header
LB: loop body
LE: loop exit
PB: predicated region body
PF: predicated region fallthrough
CT: control target
= control target key end

     0   :  { %s22_s0 = inlined_call_operand.vmem [shape: f32[32], index: 0, kind: input, shape index: {}]   ;;  %s23_s1 = inlined_call_operand.vmem [shape: f32[4,32], index: 1, kind: output, shape index: {}]  }
   0x1   :  { %v4_v0 = vld [vmem:[%s22_s0] ss:$0 sm:$0xff] }
   0x2   :  { %5 = vst [vmem:[%s23_s1] sm:$0xf] %v4_v0 }

// kernel: tile.19
= control target key start
LH: loop header
LB: loop body
LE: loop exit
PB: predicated region body
PF: predicated region fallthrough
CT: control target
= control target key end

     0   :  { %vm7_vm0 = vcmask 261120   ;;  %s37_s8 = smov 32   ;;  %s38_s9 = smov 64   ;;  %vm13_vm1 = vcmask 1048320   ;;  %vm19_vm2 = vcmask 785920   ;;  %vm25_vm3 = vcmask 523520   ;;  %s55_s0 = inlined_call_operand.vmem [shape: f32[4,32], index: 0, kind: input, shape index: {}]   ;;  %s56_s1 = inlined_call_operand.vmem [shape: f32[1,128], index: 1, kind: output, shape index: {}]  }
   0x1   :  { %v4_v0 = vld [vmem:[%s55_s0] sm:$0xf]  ;;  %s36_s0 = smov 96  }
   0x2   :  { %5 = vst [vmem:[#allocation1] sm:$0xf] %v4_v0 }
   0x9   :  { %v10_v1 = vld [vmem:[#allocation1 + $0x3] sm:$0x1]   ;;  %v22_v2 = vld [vmem:[#allocation1 + $0x1] sm:$0x1]   ;;  %v6_v3 = vld [vmem:[#allocation1] sm:$0x1]  }
   0xa   :  { %11 = vrot.lane.b32.xlu0 %v10_v1, %s36_s0  ;;  %23 = vrot.lane.b32.xlu1 %v22_v2, %s37_s8  ;;  %v16_v4 = vld [vmem:[#allocation1 + $0x2] sm:$0x1]   ;;  %8 = vst.msk [vmem:[#allocation0] sm:$0x1] %vm7_vm0, %v6_v3  }
   0xe   :  { %17 = vrot.lane.b32.xlu0 %v16_v4, %s38_s9 }
  0x7c   :  { %v12_v5 = vpop.permute.xlu0 %11   ;;  %v24_v6 = vpop.permute.xlu1 %23  }
  0x7d   :  { %14 = vst.msk [vmem:[#allocation0] sm:$0x1] %vm13_vm1, %v12_v5  }
  0x80   :  { %v18_v7 = vpop.permute.xlu0 %17  }
  0x81   :  { %20 = vst.msk [vmem:[#allocation0] sm:$0x1] %vm19_vm2, %v18_v7  }
  0x82   :  { %26 = vst.msk [vmem:[#allocation0] sm:$0x1] %vm25_vm3, %v24_v6  }
  0x89   :  { %v30_v8 = vld [vmem:[#allocation0] sm:$0x1] }
  0x8a   :  { %32 = vst [vmem:[%s56_s1] sm:$0x1] %v30_v8 }

// kernel: up_forward.3
= control target key start
LH: loop header
LB: loop body
LE: loop exit
PB: predicated region body
PF: predicated region fallthrough
CT: control target
= control target key end

     0   :  { %s880_s12 = smov 0   ;;  %s1026_s0 = inlined_call_operand.vmem [shape: bf16[2,288,128], index: 0, kind: input, shape index: {}]   ;;  %s1027_s1 = inlined_call_operand.vmem [shape: f32[1,128], index: 1, kind: input, shape index: {}]   ;;  %s1028_s2 = inlined_call_operand.vmem [shape: f32[1,128], index: 2, kind: input, shape index: {}]   ;;  %s1029_s3 = inlined_call_operand.vmem [shape: bf16[2,288,128], index: 3, kind: output, shape index: {}]  }
   0x1 LB: > { %s564_s13 = sadd.s32 4294967295, %s858_s12   ;;  %p568_p0 = scmp.ge.s32.totalorder %s858_s12, 1  ;;  %s858_s12 = sphi %s880_s12, %s13_s12  }
   0x2   : > { %p137_p1 = scmp.lt.s32.totalorder %s858_s12, 3 }
   0x4   : > { %p138_p2 = pnand %p568_p0, %p137_p1 }
   0x5   : > { %p161_p3 = scmp.lt.s32.totalorder (!%p138_p2), %s564_s13, 1  ;;  %v901_v0 = vld [vmem:[%s1027_s1] ss:$0 sm:$0xff] (!%p138_p2) }
   0x6   : > { %141 = sbr.rel (%p138_p2) target bundleno = 55 (0x37), region = 32  ;;  %v910_v9 = vld [vmem:[%s1028_s2] ss:$0 sm:$0xff] (!%p138_p2) }
   0xd   : > { %s1031_s13 = smov (!%p161_p3, %s564_s13), 1 }
   0xe   : > { %s843_s14 = smul.u32 144, %s1031_s13 }
  0x10   : > { %s896_s17 = scalar_lea.vmem %s1026_s0, %s843_s14  ;;  %s931_s24 = scalar_lea.vmem %s1029_s3, %s843_s14 }
  0x11   : > { %v648_v1 = vld [vmem:[%s896_s17] sm:$0xff]   ;;  %v809_v2 = vld [vmem:[%s896_s17 + $0x8] sm:$0xff]   ;;  %v810_v3 = vld [vmem:[%s896_s17 + $0x10] sm:$0xff]  }
  0x12   : > { %v649_v4 = vunpack.c.l.bf16 %v648_v1  ;;  %v650_v5 = vunpack.c.h.bf16 %v648_v1  ;;  %v653_v6 = vunpack.c.l.bf16 %v809_v2  ;;  %v654_v7 = vunpack.c.h.bf16 %v809_v2  ;;  %v811_v8 = vld [vmem:[%s896_s17 + $0x18] sm:$0xff]   ;;  %v812_v22 = vld [vmem:[%s896_s17 + $0x20] sm:$0xff]   ;;  %v813_v27 = vld [vmem:[%s896_s17 + $0x28] sm:$0xff]  }
  0x13   : > { %v657_v10 = vunpack.c.l.bf16 %v810_v3  ;;  %v658_v11 = vunpack.c.h.bf16 %v810_v3  ;;  %v661_v12 = vunpack.c.l.bf16 %v811_v8  ;;  %v662_v13 = vunpack.c.h.bf16 %v811_v8  ;;  %v814_v32 = vld [vmem:[%s896_s17 + $0x30] sm:$0xff]   ;;  %v815_v37 = vld [vmem:[%s896_s17 + $0x38] sm:$0xff]   ;;  %v816_v50 = vld [vmem:[%s896_s17 + $0x40] sm:$0xff]  }
  0x14   : > { %v250_v14 = vmul.f32 %v649_v4, %v901_v0  ;;  %v251_v15 = vmul.f32 %v650_v5, %v901_v0  ;;  %v252_v16 = vmul.f32 %v653_v6, %v901_v0  ;;  %v253_v17 = vmul.f32 %v654_v7, %v901_v0  ;;  %v817_v59 = vld [vmem:[%s896_s17 + $0x48] sm:$0xff]   ;;  %v818_v1 = vld [vmem:[%s896_s17 + $0x50] sm:$0xff]   ;;  %v819_v6 = vld [vmem:[%s896_s17 + $0x58] sm:$0xff]  }
  0x15   : > { %v254_v18 = vmul.f32 %v657_v10, %v901_v0  ;;  %v255_v19 = vmul.f32 %v658_v11, %v901_v0  ;;  %v256_v20 = vmul.f32 %v661_v12, %v901_v0  ;;  %v257_v21 = vmul.f32 %v662_v13, %v901_v0 }
  0x16   : > { %v293_v23 = vadd.f32 %v910_v9, %v250_v14  ;;  %v294_v24 = vadd.f32 %v910_v9, %v251_v15  ;;  %v295_v25 = vadd.f32 %v910_v9, %v252_v16  ;;  %v296_v26 = vadd.f32 %v910_v9, %v253_v17  ;;  %v820_v16 = vld [vmem:[%s896_s17 + $0x60] sm:$0xff]  }
  0x17   : > { %v297_v28 = vadd.f32 %v910_v9, %v254_v18  ;;  %v298_v29 = vadd.f32 %v910_v9, %v255_v19  ;;  %v299_v30 = vadd.f32 %v910_v9, %v256_v20  ;;  %v300_v31 = vadd.f32 %v910_v9, %v257_v21 }
  0x18   : > { %v722_v33 = vpack.c.bf16 %v294_v24, %v293_v23  ;;  %v727_v34 = vpack.c.bf16 %v296_v26, %v295_v25  ;;  %v665_v35 = vunpack.c.l.bf16 %v812_v22  ;;  %v666_v36 = vunpack.c.h.bf16 %v812_v22 }
  0x19   : > { %v732_v38 = vpack.c.bf16 %v298_v29, %v297_v28  ;;  %v737_v39 = vpack.c.bf16 %v300_v31, %v299_v30  ;;  %v669_v40 = vunpack.c.l.bf16 %v813_v27  ;;  %v670_v41 = vunpack.c.h.bf16 %v813_v27  ;;  %v821_v29 = vld [vmem:[%s896_s17 + $0x68] sm:$0xff]  }
  0x1a   : > { %723 = vst [vmem:[%s931_s24] sm:$0xff] %v722_v33   ;;  %826 = vst [vmem:[%s931_s24 + $0x8] sm:$0xff] %v727_v34   ;;  %v258_v42 = vmul.f32 %v665_v35, %v901_v0  ;;  %v259_v43 = vmul.f32 %v666_v36, %v901_v0  ;;  %v673_v44 = vunpack.c.l.bf16 %v814_v32  ;;  %v674_v45 = vunpack.c.h.bf16 %v814_v32  ;;  %v822_v34 = vld [vmem:[%s896_s17 + $0x70] sm:$0xff]  }
  0x1b   : > { %827 = vst [vmem:[%s931_s24 + $0x10] sm:$0xff] %v732_v38   ;;  %828 = vst [vmem:[%s931_s24 + $0x18] sm:$0xff] %v737_v39   ;;  %v260_v46 = vmul.f32 %v669_v40, %v901_v0  ;;  %v261_v47 = vmul.f32 %v670_v41, %v901_v0  ;;  %v677_v48 = vunpack.c.l.bf16 %v815_v37  ;;  %v678_v49 = vunpack.c.h.bf16 %v815_v37  ;;  %v823_v39 = vld [vmem:[%s896_s17 + $0x78] sm:$0xff]  }
  0x1c   : > { %v301_v51 = vadd.f32 %v910_v9, %v258_v42  ;;  %v302_v52 = vadd.f32 %v910_v9, %v259_v43  ;;  %v262_v53 = vmul.f32 %v673_v44, %v901_v0  ;;  %v263_v54 = vmul.f32 %v674_v45, %v901_v0 }
  0x1d   : > { %v303_v55 = vadd.f32 %v910_v9, %v260_v46  ;;  %v304_v56 = vadd.f32 %v910_v9, %v261_v47  ;;  %v264_v57 = vmul.f32 %v677_v48, %v901_v0  ;;  %v265_v58 = vmul.f32 %v678_v49, %v901_v0  ;;  %v824_v48 = vld [vmem:[%s896_s17 + $0x80] sm:$0xff]  }
  0x1e   : > { %v742_v60 = vpack.c.bf16 %v302_v52, %v301_v51  ;;  %v305_v61 = vadd.f32 %v910_v9, %v262_v53  ;;  %v306_v62 = vadd.f32 %v910_v9, %v263_v54  ;;  %v681_v63 = vunpack.c.l.bf16 %v816_v50 }
  0x1f   : > { %v747_v2 = vpack.c.bf16 %v304_v56, %v303_v55  ;;  %v307_v3 = vadd.f32 %v910_v9, %v264_v57  ;;  %v308_v4 = vadd.f32 %v910_v9, %v265_v58  ;;  %v682_v5 = vunpack.c.h.bf16 %v816_v50 }
  0x20   : > { %829 = vst [vmem:[%s931_s24 + $0x20] sm:$0xff] %v742_v60   ;;  %v752_v7 = vpack.c.bf16 %v306_v62, %v305_v61  ;;  %v266_v8 = vmul.f32 %v681_v63, %v901_v0  ;;  %v685_v10 = vunpack.c.l.bf16 %v817_v59  ;;  %v686_v11 = vunpack.c.h.bf16 %v817_v59  ;;  %v825_v61 = vld [vmem:[%s896_s17 + $0x88] sm:$0xff]  }
  0x21   : > { %830 = vst [vmem:[%s931_s24 + $0x28] sm:$0xff] %v747_v2   ;;  %v757_v12 = vpack.c.bf16 %v308_v4, %v307_v3  ;;  %v267_v13 = vmul.f32 %v682_v5, %v901_v0  ;;  %v689_v14 = vunpack.c.l.bf16 %v818_v1  ;;  %v690_v15 = vunpack.c.h.bf16 %v818_v1 }
  0x22   : > { %831 = vst [vmem:[%s931_s24 + $0x30] sm:$0xff] %v752_v7   ;;  %v309_v17 = vadd.f32 %v910_v9, %v266_v8  ;;  %v268_v18 = vmul.f32 %v685_v10, %v901_v0  ;;  %v269_v19 = vmul.f32 %v686_v11, %v901_v0  ;;  %v693_v20 = vunpack.c.l.bf16 %v819_v6 }
  0x23   : > { %832 = vst [vmem:[%s931_s24 + $0x38] sm:$0xff] %v757_v12   ;;  %v310_v21 = vadd.f32 %v910_v9, %v267_v13  ;;  %v270_v22 = vmul.f32 %v689_v14, %v901_v0  ;;  %v271_v23 = vmul.f32 %v690_v15, %v901_v0  ;;  %v694_v24 = vunpack.c.h.bf16 %v819_v6 }
  0x24   : > { %v311_v25 = vadd.f32 %v910_v9, %v268_v18  ;;  %v312_v26 = vadd.f32 %v910_v9, %v269_v19  ;;  %v272_v27 = vmul.f32 %v693_v20, %v901_v0  ;;  %v697_v28 = vunpack.c.l.bf16 %v820_v16 }
  0x25   : > { %v762_v30 = vpack.c.bf16 %v310_v21, %v309_v17  ;;  %v313_v31 = vadd.f32 %v910_v9, %v270_v22  ;;  %v314_v32 = vadd.f32 %v910_v9, %v271_v23  ;;  %v273_v33 = vmul.f32 %v694_v24, %v901_v0 }
  0x26   : > { %v767_v35 = vpack.c.bf16 %v312_v26, %v311_v25  ;;  %v315_v36 = vadd.f32 %v910_v9, %v272_v27  ;;  %v698_v37 = vunpack.c.h.bf16 %v820_v16  ;;  %v274_v38 = vmul.f32 %v697_v28, %v901_v0 }
  0x27   : > { %833 = vst [vmem:[%s931_s24 + $0x40] sm:$0xff] %v762_v30   ;;  %v772_v40 = vpack.c.bf16 %v314_v32, %v313_v31  ;;  %v316_v41 = vadd.f32 %v910_v9, %v273_v33  ;;  %v701_v42 = vunpack.c.l.bf16 %v821_v29  ;;  %v702_v43 = vunpack.c.h.bf16 %v821_v29 }
  0x28   : > { %834 = vst [vmem:[%s931_s24 + $0x48] sm:$0xff] %v767_v35   ;;  %v275_v44 = vmul.f32 %v698_v37, %v901_v0  ;;  %v317_v45 = vadd.f32 %v910_v9, %v274_v38  ;;  %v705_v46 = vunpack.c.l.bf16 %v822_v34  ;;  %v706_v47 = vunpack.c.h.bf16 %v822_v34 }
  0x29   : > { %835 = vst [vmem:[%s931_s24 + $0x50] sm:$0xff] %v772_v40   ;;  %v777_v49 = vpack.c.bf16 %v316_v41, %v315_v36  ;;  %v276_v50 = vmul.f32 %v701_v42, %v901_v0  ;;  %v277_v51 = vmul.f32 %v702_v43, %v901_v0  ;;  %v709_v52 = vunpack.c.l.bf16 %v823_v39 }
  0x2a   : > { %v318_v53 = vadd.f32 %v910_v9, %v275_v44  ;;  %v278_v54 = vmul.f32 %v705_v46, %v901_v0  ;;  %v279_v55 = vmul.f32 %v706_v47, %v901_v0  ;;  %v710_v56 = vunpack.c.h.bf16 %v823_v39 }
  0x2b   : > { %836 = vst [vmem:[%s931_s24 + $0x58] sm:$0xff] %v777_v49   ;;  %v319_v57 = vadd.f32 %v910_v9, %v276_v50  ;;  %v320_v58 = vadd.f32 %v910_v9, %v277_v51  ;;  %v280_v59 = vmul.f32 %v709_v52, %v901_v0  ;;  %v713_v60 = vunpack.c.l.bf16 %v824_v48 }
  0x2c   : > { %v782_v62 = vpack.c.bf16 %v318_v53, %v317_v45  ;;  %v321_v63 = vadd.f32 %v910_v9, %v278_v54  ;;  %v322_v1 = vadd.f32 %v910_v9, %v279_v55  ;;  %v281_v2 = vmul.f32 %v710_v56, %v901_v0 }
  0x2d   : > { %v787_v3 = vpack.c.bf16 %v320_v58, %v319_v57  ;;  %v323_v4 = vadd.f32 %v910_v9, %v280_v59  ;;  %v714_v5 = vunpack.c.h.bf16 %v824_v48  ;;  %v282_v6 = vmul.f32 %v713_v60, %v901_v0 }
  0x2e   : > { %837 = vst [vmem:[%s931_s24 + $0x60] sm:$0xff] %v782_v62   ;;  %v792_v7 = vpack.c.bf16 %v322_v1, %v321_v63  ;;  %v324_v8 = vadd.f32 %v910_v9, %v281_v2  ;;  %v717_v10 = vunpack.c.l.bf16 %v825_v61  ;;  %v718_v11 = vunpack.c.h.bf16 %v825_v61 }
  0x2f   : > { %838 = vst [vmem:[%s931_s24 + $0x68] sm:$0xff] %v787_v3   ;;  %v283_v12 = vmul.f32 %v714_v5, %v901_v0  ;;  %v325_v13 = vadd.f32 %v910_v9, %v282_v6 }
  0x30   : > { %839 = vst [vmem:[%s931_s24 + $0x70] sm:$0xff] %v792_v7   ;;  %v797_v14 = vpack.c.bf16 %v324_v8, %v323_v4  ;;  %v284_v15 = vmul.f32 %v717_v10, %v901_v0  ;;  %v285_v16 = vmul.f32 %v718_v11, %v901_v0 }
  0x31   : > { %v326_v17 = vadd.f32 %v910_v9, %v283_v12 }
  0x32   : > { %840 = vst [vmem:[%s931_s24 + $0x78] sm:$0xff] %v797_v14   ;;  %v327_v18 = vadd.f32 %v910_v9, %v284_v15  ;;  %v328_v19 = vadd.f32 %v910_v9, %v285_v16 }
  0x33   : > { %v802_v20 = vpack.c.bf16 %v326_v17, %v325_v13 }
  0x34   : > { %v807_v21 = vpack.c.bf16 %v328_v19, %v327_v18 }
  0x35   : > { %841 = vst [vmem:[%s931_s24 + $0x80] sm:$0xff] %v802_v20  }
  0x36   : > { %842 = vst [vmem:[%s931_s24 + $0x88] sm:$0xff] %v807_v21  }
  0x37 PF: > { %s13_s12 = sadd.s32 1, %s858_s12  }
  0x38   : > { %p10_p4 = scmp.ge.s32.totalorder %s13_s12, 4  }
  0x3a   :  { %12 = sbr.rel (!%p10_p4) target bundleno = 1 (0x1), region = 62 }

// kernel: up_forward.2
= control target key start
LH: loop header
LB: loop body
LE: loop exit
PB: predicated region body
PF: predicated region fallthrough
CT: control target
= control target key end

     0   :  { %s5746_s18 = smov 0   ;;  %s6717_s0 = inlined_call_operand.vmem [shape: bf16[2,332,8], index: 0, kind: input, shape index: {}]   ;;  %s6718_s1 = inlined_call_operand.vmem [shape: bf16[9,8,128], index: 1, kind: input, shape index: {}]   ;;  %s6719_s2 = inlined_call_operand.vmem [shape: f32[2,288,1], index: 2, kind: input, shape index: {}]   ;;  %s6720_s3 = inlined_call_operand.vmem [shape: bf16[2,288,128], index: 3, kind: output, shape index: {0}]   ;;  %s6721_s4 = inlined_call_operand.vmem [shape: f32[2,8,128], index: 4, kind: output, shape index: {1}]   ;;  %s6722_s5 = inlined_call_operand.vmem [shape: f32[2,8,128], index: 5, kind: output, shape index: {2}]  }
   0x1 LB: > { %s4384_s19 = sadd.s32 4294967295, %s5713_s18   ;;  %p4388_p0 = scmp.ge.s32.totalorder %s5713_s18, 1  ;;  %s5713_s18 = sphi %s5746_s18, %s16_s18  }
   0x2   : > { %p202_p1 = scmp.lt.s32.totalorder %s5713_s18, 3 }
   0x4   : > { %p203_p2 = pnand %p4388_p0, %p202_p1 }
   0x5   : > { %vm604_vm0 = vcmask (!%p203_p2), 1043456   ;;  %v4508_v0 = vld [vmem:[%s6718_s1 + $0x10] sm:$0xf] (!%p203_p2)  ;;  %v4394_v1 = vld [vmem:[%s6718_s1 + $0x4] sm:$0xf] (!%p203_p2)  ;;  %p243_p3 = scmp.lt.s32.totalorder (!%p203_p2), %s4384_s19, 1 }
   0x6   : > { %206 = sbr.rel (%p203_p2) target bundleno = 579 (0x243), region = 32  ;;  %5614 = vmatprep.subr.msk.bf16.mxu0 (!%p203_p2), %vm604_vm0, %v4508_v0  ;;  %5610 = vmatprep.subr.msk.bf16.mxu1 (!%p203_p2), %vm604_vm0, %v4394_v1  ;;  %v5763_v2 = vsel (!%p203_p2), %vm604_vm0, %v4508_v0, 0  ;;  %v606_v3 = vsel (!%p203_p2), %vm604_vm0, %v4394_v1, 0  ;;  %v4528_v4 = vld [vmem:[%s6718_s1 + $0x14] sm:$0xf] (!%p203_p2)  ;;  %vm549_vm2 = vcmask (!%p203_p2), 64512  }
   0x7   : > { %5131 = vmatpush3.bf16.msra.mxu0 (!%p203_p2), %v5763_v2  ;;  %4979 = vmatpush3.bf16.msra.mxu1 (!%p203_p2), %v606_v3  ;;  %v303_v5 = vld [vmem:[%s6718_s1] sm:$0xf] (!%p203_p2)  ;;  %vm400_vm1 = vsmask.f32 (!%p203_p2), 7424  ;;  %v5784_v6 = vsel (!%p203_p2), %vm604_vm0, %v4528_v4, 0  ;;  %vm2207_vm4 = vcmask (!%p203_p2), 1045504  }
   0x8   : > { %5616 = vmatprep.subr.msk.bf16.mxu0 (!%p203_p2), %vm604_vm0, %v4528_v4  ;;  %5611 = vmatprep.subr.msk.bf16.mxu1 (!%p203_p2), %vm604_vm0, %v303_v5  ;;  %vm1760_vm3 = vsmask.f32 (!%p203_p2), 6400  ;;  %v822_v12 = vsel (!%p203_p2), %vm604_vm0, %v303_v5, 0  ;;  %v5832_v39 = vld [vmem:[%s6718_s1 + $0x8] sm:$0xf] (!%p203_p2)  ;;  %vm1007_vm5 = vcmask (!%p203_p2), 1046528  }
   0x9   : > { %v5866_v1 = vld [vmem:[%s6718_s1 + $0x18] sm:$0xf] (!%p203_p2)  ;;  %vm2960_vm6 = vsmask.f32 (!%p203_p2), 5376  ;;  %vm3407_vm7 = vcmask (!%p203_p2), 1044480  }
   0xd   : > { %s6724_s19 = smov (!%p243_p3, %s4384_s19), 1 }
   0xe   : > { %s5620_s28 = smul.u32 168, %s6724_s19  ;;  %s4392_s29 = sshll.u32 %s6724_s19, 3 }
   0xf   : > { %s5621_s21 = smul.u32 288, %s6724_s19  ;;  %s261_s7 = scalar_lea.vmem %s6721_s4, %s4392_s29 }
  0x10   : > { %s5781_s6 = scalar_lea.vmem %s6717_s0, %s5620_s28  ;;  %s5622_s25 = smul.u32 144, %s6724_s19 }
  0x11   : > { %v267_v7 = vld [vmem:[%s5781_s6] sm:$0xf]  ;;  %v5788_v8 = vld [vmem:[%s5781_s6 + $0x4] sm:$0xf]  ;;  %v5794_v10 = vld [vmem:[%s5781_s6 + $0x8] sm:$0xff]   ;;  %s6262_s24 = scalar_lea.vmem %s6719_s2, %s5621_s21  ;;  %s265_s10 = scalar_lea.vmem %s6722_s5, %s4392_s29 }
  0x12   : > { %v5791_v9 = vcombine.low %v267_v7, %v5788_v8  ;;  %v1315_v11 = vld [vmem:[%s5781_s6 + $0x8] sm:$0xe]  ;;  %v5799_v13 = vld [vmem:[%s5781_s6 + $0xc] sm:$0xf]  ;;  %v409_v16 = vshll.u32 %v5794_v10, 16  ;;  %v413_v17 = vshrl.u32 %v5794_v10, 16  ;;  %s6644_s28 = scalar_lea.vmem %s6720_s3, %s5622_s25 }
  0x13   : > { %v5806_v18 = vld [vmem:[%s5781_s6 + $0x10] sm:$0xff]   ;;  %v5812_v20 = vcombine.low %v1315_v11, %v5799_v13  ;;  %v5820_v28 = vld [vmem:[%s5781_s6 + $0x18] sm:$0xff]   ;;  %v5826_v34 = vld [vmem:[%s5781_s6 + $0x20] sm:$0xff]  }
  0x14   : > { %v402_v14 = vshrl.u32 %v5791_v9, 16  ;;  %v404_v15 = vshll.u32 %v5791_v9, 16  ;;  %v5809_v19 = vld [vmem:[%s5781_s6 + $0x10] sm:$0xff]   ;;  %v411_v22 = vrot.slane %v409_v16, 1  ;;  %v1770_v23 = vshrl.u32 %v5806_v18, 16  ;;  %v5823_v33 = vld [vmem:[%s5781_s6 + $0x18] sm:$0xff]  }
  0x15   : > { %v1773_v24 = vshll.u32 %v5806_v18, 16  ;;  %v1762_v25 = vshrl.u32 %v5812_v20, 16  ;;  %v1765_v26 = vshll.u32 %v5812_v20, 16  ;;  %v417_v27 = vshll.u32 %v5809_v19, 16  ;;  %v5841_v48 = vld [vmem:[%s5781_s6 + $0x20] sm:$0xff]   ;;  %v5844_v49 = vld [vmem:[%s5781_s6 + $0x28] sm:$0xff]  }
  0x16   : > { %v406_v21 = vrot.slane %v404_v15, 1  ;;  %v415_v30 = vor.u32 %v413_v17, %v411_v22  ;;  %v1772_v31 = vrot.slane %v1770_v23, 1  ;;  %v1779_v38 = vshrl.u32 %v5820_v28, 16  ;;  %v5850_v54 = vld [vmem:[%s5781_s6 + $0x28] sm:$0xff]   ;;  %v5856_v59 = vld [vmem:[%s5781_s6 + $0x30] sm:$0xff]   ;;  %v5880_v23 = vld [vmem:[%s5781_s6 + $0x38] sm:$0xff]  }
  0x17   : > { %v1775_v32 = vrot.slane %v1773_v24, 2  ;;  %v1764_v35 = vrot.slane %v1762_v25, 1  ;;  %v1767_v36 = vrot.slane %v1765_v26, 2  ;;  %v419_v37 = vrot.slane %v417_v27, 1  ;;  %v5861_v0 = vld [vmem:[%s5781_s6 + $0x30] sm:$0xff]  }
  0x18   : > { %v407_v29 = vor.u32 %v406_v21, %v402_v14  ;;  %v1782_v42 = vshll.u32 %v5820_v28, 16  ;;  %v421_v43 = vshrl.u32 %v5809_v19, 16  ;;  %v1781_v46 = vrot.slane %v1779_v38, 1 }
  0x19   : > { %v1776_v41 = vor.u32 %v1775_v32, %v1772_v31  ;;  %v1768_v44 = vor.u32 %v1767_v36, %v1764_v35  ;;  %v420_v45 = vsel %vm400_vm1, %v415_v30, %v419_v37  ;;  %v425_v47 = vshll.u32 %v5823_v33, 16  ;;  %v5889_v35 = vld [vmem:[%s5781_s6 + $0x38] sm:$0xff]  }
  0x1a   : > { %v412_v40 = vsel %vm400_vm1, %v407_v29, %v411_v22  ;;  %v1784_v50 = vrot.slane %v1782_v42, 2  ;;  %v423_v51 = vor.u32 %v421_v43, %v419_v37  ;;  %v1788_v52 = vshrl.u32 %v5826_v34, 16 }
  0x1b   : > { %4980 = vmatprep.mubr.msk.bf16.mxu1 %vm549_vm2, %v412_v40  ;;  %v1791_v53 = vshll.u32 %v5826_v34, 16  ;;  %v1777_v55 = vsel %vm1760_vm3, %v1768_v44, %v1776_v41  ;;  %v427_v56 = vrot.slane %v425_v47, 1  ;;  %v429_v57 = vshrl.u32 %v5823_v33, 16  ;;  %v5900_v44 = vld [vmem:[%s5781_s6 + $0x40] sm:$0xff]  }
  0x1c   : > { %4981 = vmatmul.mubr.msk.bf16.vlgmr.msra.gmra.mrb[0].mxu1 %vm549_vm2, %v420_v45  ;;  %v433_v58 = vshll.u32 %v5841_v48, 16  ;;  %5132 = vmatprep.mubr.msk.bf16.mxu0 %vm549_vm2, %v1777_v55  ;;  %v1785_v60 = vor.u32 %v1784_v50, %v1781_v46  ;;  %v1790_v61 = vrot.slane %v1788_v52, 1  ;;  %v1797_v63 = vshrl.u32 %v5844_v49, 16 }
  0x1d   : > { %5017 = vmatpush3.bf16.msra.mxu1 %v822_v12  ;;  %v1793_v62 = vrot.slane %v1791_v53, 2  ;;  %v428_v3 = vsel %vm400_vm1, %v423_v51, %v427_v56  ;;  %v431_v4 = vor.u32 %v429_v57, %v427_v56  ;;  %v1800_v7 = vshll.u32 %v5844_v49, 16  ;;  %v5905_v51 = vld [vmem:[%s5781_s6 + $0x40] sm:$0xff]  }
  0x1e   : > { %5612 = vmatprep.subr.msk.bf16.mxu1 %vm604_vm0, %v5832_v39  ;;  %v435_v5 = vrot.slane %v433_v58, 1  ;;  %v1786_v11 = vsel %vm1760_vm3, %v1776_v41, %v1785_v60  ;;  %4984 = vmatprep.mubr.msk.bf16.mxu1 %vm549_vm2, %v428_v3  ;;  %v1799_v14 = vrot.slane %v1797_v63, 1  ;;  %v437_v15 = vshrl.u32 %v5841_v48, 16  ;;  %v5916_v63 = vld [vmem:[%s5781_s6 + $0x48] sm:$0xff]  }
  0x1f   : > { %v1794_v12 = vor.u32 %v1793_v62, %v1790_v61  ;;  %5133 = vmatmul.mubr.msk.bf16.vlgmr.msra.gmra.mrb[0].mxu0 %vm549_vm2, %v1786_v11  ;;  %v1802_v17 = vrot.slane %v1800_v7, 2  ;;  %v441_v21 = vshll.u32 %v5850_v54, 16  ;;  %v1806_v22 = vshrl.u32 %v5856_v59, 16  ;;  %v5913_v62 = vld [vmem:[%s5781_s6 + $0x48] sm:$0xff]  }
  0x20   : > { %v436_v16 = vsel %vm400_vm1, %v431_v4, %v435_v5  ;;  %5169 = vmatpush3.bf16.msra.mxu0 %v5784_v6  ;;  %v439_v25 = vor.u32 %v437_v15, %v435_v5  ;;  %v1809_v26 = vshll.u32 %v5856_v59, 16  ;;  %v445_v27 = vshrl.u32 %v5850_v54, 16 }
  0x21   : > { %v1795_v24 = vsel %vm1760_vm3, %v1785_v60, %v1794_v12  ;;  %v1803_v29 = vor.u32 %v1802_v17, %v1799_v14  ;;  %v443_v30 = vrot.slane %v441_v21, 1  ;;  %v1808_v31 = vrot.slane %v1806_v22, 1  ;;  %5617 = vmatprep.subr.msk.bf16.mxu0 %vm604_vm0, %v5866_v1  ;;  %v5925_v14 = vld [vmem:[%s5781_s6 + $0x50] sm:$0xff]  }
  0x22   : > { %5136 = vmatprep.mubr.msk.bf16.mxu0 %vm549_vm2, %v1795_v24  ;;  %v449_v32 = vshll.u32 %v5861_v0, 16  ;;  %v1811_v6 = vrot.slane %v1809_v26, 2  ;;  %v1815_v36 = vshrl.u32 %v5880_v23, 16  ;;  %v1818_v37 = vshll.u32 %v5880_v23, 16 }
  0x23   : > { %v453_v38 = vshrl.u32 %v5861_v0, 16  ;;  %v1804_v40 = vsel %vm1760_vm3, %v1794_v12, %v1803_v29  ;;  %v444_v41 = vsel %vm400_vm1, %v439_v25, %v443_v30  ;;  %v447_v42 = vor.u32 %v445_v27, %v443_v30  ;;  %v5933_v25 = vld [vmem:[%s5781_s6 + $0x50] sm:$0xff]  }
  0x24   : > { %4985 = vmatmul.mubr.msk.bf16.gmra.mrb[4].mxu1 %vm549_vm2, %v436_v16  ;;  %v451_v43 = vrot.slane %v449_v32, 1  ;;  %v1812_v45 = vor.u32 %v1811_v6, %v1808_v31  ;;  %v1817_v46 = vrot.slane %v1815_v36, 1  ;;  %v1820_v47 = vrot.slane %v1818_v37, 2 }
  0x25   : > { %4988 = vmatprep.mubr.msk.bf16.mxu1 %vm549_vm2, %v444_v41  ;;  %v457_v50 = vshll.u32 %v5889_v35, 16  ;;  %v1824_v55 = vshrl.u32 %v5900_v44, 16  ;;  %v1827_v56 = vshll.u32 %v5900_v44, 16  ;;  %v461_v61 = vshrl.u32 %v5889_v35, 16  ;;  %v5943_v41 = vld [vmem:[%s5781_s6 + $0x58] sm:$0xff]  }
  0x26   : > { %v452_v52 = vsel %vm400_vm1, %v447_v42, %v451_v43  ;;  %v455_v53 = vor.u32 %v453_v38, %v451_v43  ;;  %v1813_v57 = vsel %vm1760_vm3, %v1803_v29, %v1812_v45  ;;  %v1821_v58 = vor.u32 %v1820_v47, %v1817_v46  ;;  %v5938_v29 = vld [vmem:[%s5781_s6 + $0x58] sm:$0xff]  }
  0x27   : > { %v459_v60 = vrot.slane %v457_v50, 1  ;;  %5137 = vmatmul.mubr.msk.bf16.gmra.mrb[4].mxu0 %vm549_vm2, %v1804_v40  ;;  %v1826_v3 = vrot.slane %v1824_v55, 1  ;;  %v1829_v4 = vrot.slane %v1827_v56, 2  ;;  %v465_v5 = vshll.u32 %v5905_v51, 16 }
  0x28   : > { %v469_v7 = vshrl.u32 %v5905_v51, 16  ;;  %5140 = vmatprep.mubr.msk.bf16.mxu0 %vm549_vm2, %v1813_v57  ;;  %v1833_v12 = vshrl.u32 %v5913_v62, 16  ;;  %v1836_v16 = vshll.u32 %v5913_v62, 16  ;;  %v473_v17 = vshll.u32 %v5916_v63, 16  ;;  %v2201_v57 = vld [vmem:[%s5781_s6 + $0x8] sm:$0xc] }
  0x29   : > { %v460_v11 = vsel %vm400_vm1, %v455_v53, %v459_v60  ;;  %v1830_v15 = vor.u32 %v1829_v4, %v1826_v3  ;;  %v467_v21 = vrot.slane %v465_v5, 1  ;;  %v1842_v22 = vshrl.u32 %v5925_v14, 16 }
  0x2a   : > { %v1845_v24 = vshll.u32 %v5925_v14, 16  ;;  %v1822_v26 = vsel %vm1760_vm3, %v1812_v45, %v1821_v58  ;;  %v463_v27 = vor.u32 %v461_v61, %v459_v60  ;;  %v1835_v30 = vrot.slane %v1833_v12, 1 }
  0x2b   : > { %v1838_v31 = vrot.slane %v1836_v16, 2  ;;  %v471_v32 = vor.u32 %v469_v7, %v467_v21  ;;  %v475_v6 = vrot.slane %v473_v17, 1  ;;  %v1831_v36 = vsel %vm1760_vm3, %v1821_v58, %v1830_v15  ;;  %v5957_v58 = vld [vmem:[%s5781_s6 + $0x60] sm:$0xff]  }
  0x2c   : > { %4989 = vmatmul.mubr.msk.bf16.gmra.mrb[8].mxu1 %vm549_vm2, %v452_v52  ;;  %v1844_v37 = vrot.slane %v1842_v22, 1  ;;  %v1847_v38 = vrot.slane %v1845_v24, 2  ;;  %v481_v40 = vshll.u32 %v5933_v25, 16  ;;  %v468_v42 = vsel %vm400_vm1, %v463_v27, %v467_v21 }
  0x2d   : > { %4992 = vmatprep.mubr.msk.bf16.mxu1 %vm549_vm2, %v460_v11  ;;  %v477_v43 = vshrl.u32 %v5916_v63, 16  ;;  %v1851_v45 = vshrl.u32 %v5938_v29, 16  ;;  %v1854_v46 = vshll.u32 %v5938_v29, 16  ;;  %v1839_v47 = vor.u32 %v1838_v31, %v1835_v30  ;;  %v5962_v11 = vld [vmem:[%s5781_s6 + $0x68] sm:$0xff]  }
  0x2e   : > { %v476_v50 = vsel %vm400_vm1, %v471_v32, %v475_v6  ;;  %v485_v52 = vshrl.u32 %v5933_v25, 16  ;;  %v489_v53 = vshll.u32 %v5943_v41, 16  ;;  %v1848_v55 = vor.u32 %v1847_v38, %v1844_v37  ;;  %v5979_v32 = vld [vmem:[%s5781_s6 + $0x70] sm:$0xff]  }
  0x2f   : > { %5141 = vmatmul.mubr.msk.bf16.gmra.mrb[8].mxu0 %vm549_vm2, %v1822_v26  ;;  %v483_v56 = vrot.slane %v481_v40, 1  ;;  %v479_v60 = vor.u32 %v477_v43, %v475_v6  ;;  %v1853_v61 = vrot.slane %v1851_v45, 1  ;;  %v1856_v3 = vrot.slane %v1854_v46, 2  ;;  %v5985_v40 = vld [vmem:[%s5781_s6 + $0x78] sm:$0xff]  }
  0x30   : > { %5144 = vmatprep.mubr.msk.bf16.mxu0 %vm549_vm2, %v1831_v36  ;;  %v1840_v4 = vsel %vm1760_vm3, %v1830_v15, %v1839_v47  ;;  %v491_v7 = vrot.slane %v489_v53, 1  ;;  %v1849_v12 = vsel %vm1760_vm3, %v1839_v47, %v1848_v55  ;;  %v4529_v16 = vcombine.low %v2201_v57, %v5799_v13 }
  0x31   : > { %v487_v5 = vor.u32 %v485_v52, %v483_v56  ;;  %v497_v17 = vshll.u32 %v5957_v58, 16  ;;  %v484_v21 = vsel %vm400_vm1, %v479_v60, %v483_v56  ;;  %v493_v22 = vshrl.u32 %v5943_v41, 16  ;;  %v6000_v56 = vld [vmem:[%s5781_s6 + $0x80] sm:$0xff]  }
  0x32   : > { %v5971_v15 = vor.u32 %v1856_v3, %v1853_v61  ;;  %v501_v26 = vshrl.u32 %v5957_v58, 16  ;;  %v505_v27 = vshll.u32 %v5962_v11, 16  ;;  %v2208_v13 = vrot.slane %v4529_v16, 2 }
  0x33   : > { %v492_v24 = vsel %vm400_vm1, %v487_v5, %v491_v7  ;;  %v2209_v30 = vrot.slane %v5806_v18, 2  ;;  %v499_v31 = vrot.slane %v497_v17, 1  ;;  %v495_v6 = vor.u32 %v493_v22, %v491_v7 }
  0x34   : > { %4993 = vmatmul.mubr.msk.bf16.gmra.mrb[12].mxu1 %vm549_vm2, %v468_v42  ;;  %v1858_v36 = vsel %vm1760_vm3, %v1848_v55, %v5971_v15  ;;  %v507_v38 = vrot.slane %v505_v27, 1  ;;  %v513_v18 = vshll.u32 %v5979_v32, 16  ;;  %v2211_v45 = vrot.slane %v5820_v28, 2  ;;  %v6030_v27 = vld [vmem:[%s5781_s6 + $0x90] ss:$0 sps:$4 sm:$0x11]  }
  0x35   : > { %4996 = vmatprep.mubr.msk.bf16.mxu1 %vm549_vm2, %v476_v50  ;;  %v503_v37 = vor.u32 %v501_v26, %v499_v31  ;;  %v2210_v42 = vsel %vm2207_vm4, %v2208_v13, %v2209_v30  ;;  %v500_v43 = vsel %vm400_vm1, %v495_v6, %v499_v31  ;;  %v509_v46 = vshrl.u32 %v5962_v11, 16 }
  0x36   : > { %v517_v50 = vshrl.u32 %v5979_v32, 16  ;;  %v521_v52 = vshll.u32 %v5985_v40, 16  ;;  %v2213_v53 = vrot.slane %v5826_v34, 2  ;;  %v515_v55 = vrot.slane %v513_v18, 1  ;;  %v6013_v34 = vld [vmem:[%s6718_s1 + $0x1c] sm:$0xf] }
  0x37   : > { %5145 = vmatmul.mubr.msk.bf16.gmra.mrb[12].mxu0 %vm549_vm2, %v1840_v4  ;;  %v508_v47 = vsel %vm400_vm1, %v503_v37, %v507_v38  ;;  %v2739_v28 = vsel %vm604_vm0, %v5866_v1, 0  ;;  %v511_v57 = vor.u32 %v509_v46, %v507_v38  ;;  %v2212_v60 = vsel %vm2207_vm4, %v2209_v30, %v2211_v45  ;;  %v6007_v4 = vld [vmem:[%s5781_s6 + $0x88] sm:$0xff]  }
  0x38   : > { %5148 = vmatprep.mubr.msk.bf16.mxu0 %vm549_vm2, %v1849_v12  ;;  %v519_v61 = vor.u32 %v517_v50, %v515_v55  ;;  %v523_v3 = vrot.slane %v521_v52, 1  ;;  %v2214_v5 = vsel %vm2207_vm4, %v2211_v45, %v2213_v53  ;;  %v529_v7 = vshll.u32 %v6000_v56, 16 }
  0x39   : > { %v516_v1 = vsel %vm400_vm1, %v511_v57, %v515_v55  ;;  %v2215_v12 = vrot.slane %v5844_v49, 2  ;;  %v525_v16 = vshrl.u32 %v5985_v40, 16  ;;  %v537_v22 = vshll.u32 %v6007_v4, 16  ;;  %v6057_v55 = vld [vmem:[%s5781_s6 + $0x60] sm:$0xff]   ;;  %v6076_v57 = vld [vmem:[%s5781_s6 + $0x68] sm:$0xff]  }
  0x3a   : > { %v524_v17 = vsel %vm400_vm1, %v519_v61, %v523_v3  ;;  %v531_v26 = vrot.slane %v529_v7, 1  ;;  %v545_v37 = vshll.u32 %v6030_v27, 16  ;;  %v2219_v38 = vrot.slane %v5880_v23, 2  ;;  %v6094_v7 = vld [vmem:[%s5781_s6 + $0x78] sm:$0xff]  }
  0x3b   : > { %v527_v49 = vor.u32 %v525_v16, %v523_v3  ;;  %v2216_v13 = vsel %vm2207_vm4, %v2213_v53, %v2215_v12  ;;  %v539_v31 = vrot.slane %v537_v22, 1  ;;  %v2221_v18 = vrot.slane %v5900_v44, 2  ;;  %v6110_v22 = vld [vmem:[%s5781_s6 + $0x88] sm:$0xff]  }
  0x3c   : > { %4997 = vmatmul.mubr.msk.bf16.gmra.mrb[16].mxu1 %vm549_vm2, %v484_v21  ;;  %v533_v21 = vshrl.u32 %v6000_v56, 16  ;;  %v547_v45 = vrot.slane %v545_v37, 1  ;;  %v2223_v23 = vrot.slane %v5913_v62, 2  ;;  %v2225_v44 = vrot.slane %v5925_v14, 2 }
  0x3d   : > { %5000 = vmatprep.mubr.msk.bf16.mxu1 %vm549_vm2, %v492_v24  ;;  %v2217_v24 = vrot.slane %v5856_v59, 2  ;;  %v532_v59 = vsel %vm400_vm1, %v527_v49, %v531_v26  ;;  %v2227_v62 = vrot.slane %v5938_v29, 2  ;;  %v1100_v14 = vsel %vm604_vm0, %v5832_v39, 0 }
  0x3e   : > { %v535_v30 = vor.u32 %v533_v21, %v531_v26  ;;  %v2224_v52 = vsel %vm2207_vm4, %v2221_v18, %v2223_v23  ;;  %v2226_v53 = vsel %vm2207_vm4, %v2223_v23, %v2225_v44  ;;  %v2231_v61 = vrot.slane %v6076_v57, 2  ;;  %v6114_v26 = vld [vmem:[%s5781_s6 + $0x90] sm:$0xff]  }
  0x3f   : > { %5149 = vmatmul.mubr.msk.bf16.gmra.mrb[16].mxu0 %vm549_vm2, %v1858_v36  ;;  %v2218_v6 = vsel %vm2207_vm4, %v2215_v12, %v2217_v24  ;;  %v541_v36 = vshrl.u32 %v6007_v4, 16  ;;  %v2220_v46 = vsel %vm2207_vm4, %v2217_v24, %v2219_v38  ;;  %v2228_v29 = vsel %vm2207_vm4, %v2225_v44, %v2227_v62  ;;  %v6098_v12 = vld [vmem:[%s5781_s6 + $0x80] sm:$0xff]  }
  0x40   : > { %5170 = vmatprep.mubr.msk.bf16.mxu0 %vm549_vm2, %v2210_v42  ;;  %v540_v42 = vsel %vm400_vm1, %v535_v30, %v539_v31  ;;  %v2235_v16 = vrot.slane %v6094_v7, 2  ;;  %v2239_v49 = vrot.slane %v6110_v22, 2  ;;  %v2515_v30 = vld [vmem:[%s5781_s6 + $0x10] sm:$0xc] }
  0x44   : > { %5001 = vmatmul.mubr.msk.bf16.gmra.mrb[20].mxu1 %vm549_vm2, %v500_v43  ;;  %v543_v43 = vor.u32 %v541_v36, %v539_v31  ;;  %v6124_v31 = vld [vmem:[%s5781_s6 + $0x14] sm:$0xf] }
  0x45   : > { %5004 = vmatprep.mubr.msk.bf16.mxu1 %vm549_vm2, %v508_v47  ;;  %v2222_v47 = vsel %vm2207_vm4, %v2219_v38, %v2221_v18  ;;  %v6134_v37 = vcombine.low %v2515_v30, %v6124_v31  ;;  %v6137_v38 = vld [vmem:[%s5781_s6 + $0x18] sm:$0xff]  }
  0x46   : > { %v548_v50 = vsel %vm400_vm1, %v543_v43, %v547_v45  ;;  %v2648_v43 = vrot.slane %v6137_v38, 2 }
  0x47   : > { %5171 = vmatmul.mubr.msk.bf16.vlgmr.msra.gmra.mrb[0].mxu0 %vm549_vm2, %v2212_v60  ;;  %v6082_v60 = vld [vmem:[%s5781_s6 + $0x70] sm:$0xff]   ;;  %v2647_v18 = vrot.slane %v6134_v37, 2 }
  0x48   : > { %5207 = vmatpush3.bf16.msra.mxu0 %v2739_v28  ;;  %5174 = vmatprep.mubr.msk.bf16.mxu0 %vm549_vm2, %v2214_v5  ;;  %v2229_v28 = vrot.slane %v6057_v55, 2  ;;  %v2233_v3 = vrot.slane %v6082_v60, 2 }
  0x49   : > { %5618 = vmatprep.subr.msk.bf16.mxu0 %vm604_vm0, %v6013_v34 }
  0x4a   : > { %v2230_v39 = vsel %vm2207_vm4, %v2227_v62, %v2229_v28  ;;  %v2232_v5 = vsel %vm2207_vm4, %v2229_v28, %v2231_v61  ;;  %v2236_v21 = vsel %vm2207_vm4, %v2233_v3, %v2235_v16  ;;  %v3186_v62 = vsel %vm604_vm0, %v6013_v34, 0  ;;  %v6172_v28 = vld [vmem:[%s5781_s6 + $0x38] sm:$0xff]  }
  0x4c   : > { %5005 = vmatmul.mubr.msk.bf16.gmra.mrb[24].mxu1 %vm549_vm2, %v516_v1  ;;  %v2234_v1 = vsel %vm2207_vm4, %v2231_v61, %v2233_v3  ;;  %v2656_v61 = vrot.slane %v6172_v28, 2  ;;  %v6191_v3 = vld [vmem:[%s5781_s6 + $0x40] sm:$0xff]  }
  0x4d   : > { %5008 = vmatprep.mubr.msk.bf16.mxu1 %vm549_vm2, %v524_v17  ;;  %v2237_v17 = vrot.slane %v6098_v12, 2 }
  0x4f   : > { %5175 = vmatmul.mubr.msk.bf16.gmra.mrb[4].mxu0 %vm549_vm2, %v2216_v13  ;;  %v2238_v24 = vsel %vm2207_vm4, %v2235_v16, %v2237_v17  ;;  %v2241_v13 = vrot.slane %v6114_v26, 2  ;;  %v1001_v16 = vld [vmem:[%s5781_s6] sm:$0xe] }
  0x50   : > { %5178 = vmatprep.mubr.msk.bf16.mxu0 %vm549_vm2, %v2218_v6  ;;  %v2240_v6 = vsel %vm2207_vm4, %v2237_v17, %v2239_v49  ;;  %v2658_v17 = vrot.slane %v6191_v3, 2 }
  0x51   : > { %v2242_v36 = vsel %vm2207_vm4, %v2239_v49, %v2241_v13 }
  0x52   : > { %v2659_v49 = vsel %vm2207_vm4, %v2656_v61, %v2658_v17 }
  0x54   : > { %5009 = vmatmul.mubr.msk.bf16.gmra.mrb[28].mxu1 %vm549_vm2, %v532_v59  ;;  %v6130_v59 = vld [vmem:[%s5781_s6 + $0x98] ss:$0 sps:$4 sm:$0x33]  }
  0x55   : > { %5012 = vmatprep.mubr.msk.bf16.mxu1 %vm549_vm2, %v540_v42  ;;  %v2243_v42 = vrot.slane %v6130_v59, 2 }
  0x57   : > { %5179 = vmatmul.mubr.msk.bf16.gmra.mrb[8].mxu0 %vm549_vm2, %v2220_v46  ;;  %v2244_v45 = vsel %vm2207_vm4, %v2241_v13, %v2243_v42  ;;  %v6150_v46 = vld [vmem:[%s5781_s6 + $0x20] sm:$0xff]   ;;  %v6209_v13 = vld [vmem:[%s5781_s6 + $0x50] sm:$0xff]  }
  0x58   : > { %5182 = vmatprep.mubr.msk.bf16.mxu0 %vm549_vm2, %v2222_v47  ;;  %v2649_v47 = vsel %vm2207_vm4, %v2647_v18, %v2648_v43  ;;  %v2650_v23 = vrot.slane %v6150_v46, 2  ;;  %v2662_v42 = vrot.slane %v6209_v13, 2 }
  0x5c   : > { %5013 = vmatmul.mubr.msk.bf16.gmra.mrb[32].mxu1 %vm549_vm2, %v548_v50  ;;  %v6154_v50 = vld [vmem:[%s5781_s6 + $0x28] sm:$0xff]  }
  0x5d   : > { %5018 = vmatprep.mubr.msk.bf16.mxu1 %vm549_vm2, %v5791_v9  ;;  %v6068_v9 = vld [vmem:[%s6718_s1 + $0xc] sm:$0xf]  ;;  %v2652_v44 = vrot.slane %v6154_v50, 2 }
  0x5f   : > { %5183 = vmatmul.mubr.msk.bf16.gmra.mrb[12].mxu0 %vm549_vm2, %v2224_v52  ;;  %v2651_v52 = vsel %vm2207_vm4, %v2648_v43, %v2650_v23 }
  0x60   : > { %5186 = vmatprep.mubr.msk.bf16.mxu0 %vm549_vm2, %v2226_v53  ;;  %v6166_v53 = vld [vmem:[%s5781_s6 + $0x30] sm:$0xff]  }
  0x64   : > { %5019 = vmatmul.mubr.msk.bf16.vlgmr.msra.gmra.mrb[0].mxu1 %vm549_vm2, %v5794_v10 }
  0x65   : > { %5022 = vmatprep.mubr.msk.bf16.mxu1 %vm549_vm2, %v5809_v19  ;;  %5055 = vmatpush3.bf16.msra.mxu1 %v1100_v14  ;;  %v2653_v14 = vsel %vm2207_vm4, %v2650_v23, %v2652_v44  ;;  %v1013_v23 = vrot.slane %v5823_v33, 1 }
  0x66   : > { %5613 = vmatprep.subr.msk.bf16.mxu1 %vm604_vm0, %v6068_v9 }
  0x67   : > { %5187 = vmatmul.mubr.msk.bf16.gmra.mrb[16].mxu0 %vm549_vm2, %v2228_v29  ;;  %v6177_v29 = vld [vmem:[%s6718_s1 + $0x20] sm:$0xf] }
  0x68   : > { %5190 = vmatprep.mubr.msk.bf16.mxu0 %vm549_vm2, %v2230_v39  ;;  %v2654_v39 = vrot.slane %v6166_v53, 2 }
  0x6a   : > { %v2655_v34 = vsel %vm2207_vm4, %v2652_v44, %v2654_v39 }
  0x6c   : > { %5023 = vmatmul.mubr.msk.bf16.gmra.mrb[4].mxu1 %vm549_vm2, %v5823_v33 }
  0x6d   : > { %5026 = vmatprep.mubr.msk.bf16.mxu1 %vm549_vm2, %v5841_v48 }
  0x6f   : > { %5191 = vmatmul.mubr.msk.bf16.gmra.mrb[20].mxu0 %vm549_vm2, %v2232_v5  ;;  %v2657_v5 = vsel %vm2207_vm4, %v2654_v39, %v2656_v61  ;;  %v1539_v39 = vsel %vm604_vm0, %v6068_v9, 0  ;;  %v5715_v61 = vmov 0   ;;  %v5696_v9 = vld [vmem:[%s6718_s1 + $0x10] sm:$0xf] }
  0x70   : > { %5194 = vmatprep.mubr.msk.bf16.mxu0 %vm549_vm2, %v2234_v1  ;;  %v6195_v1 = vld [vmem:[%s5781_s6 + $0x48] sm:$0xff]   ;;  %5632 = vset.pattern.permute.xlu0 %v5715_v61 }
  0x71   : > { %5633 = vset.pattern.permute.xlu1 %v5715_v61  ;;  %v3721_v61 = vld [vmem:[%s6262_s24 + $0x30] sm:$0xff] }
  0x74   : > { %5027 = vmatmul.mubr.msk.bf16.gmra.mrb[8].mxu1 %vm549_vm2, %v5850_v54 }
  0x75   : > { %5030 = vmatprep.mubr.msk.bf16.mxu1 %vm549_vm2, %v5861_v0 }
  0x77   : > { %5195 = vmatmul.mubr.msk.bf16.gmra.mrb[24].mxu0 %vm549_vm2, %v2236_v21  ;;  %v4451_v21 = vcombine.low %v1001_v16, %v5788_v8  ;;  %v6214_v8 = vld [vmem:[%s5781_s6 + $0x58] sm:$0xff]   ;;  %v6247_v16 = vld [vmem:[%s5781_s6 + $0x70] sm:$0xff]  }
  0x78   : > { %5198 = vmatprep.mubr.msk.bf16.mxu0 %vm549_vm2, %v2238_v24  ;;  %v2660_v24 = vrot.slane %v6195_v1, 2  ;;  %v2664_v43 = vrot.slane %v6214_v8, 2 }
  0x79   : > { %v1008_v30 = vrot.slane %v4451_v21, 1 }
  0x7a   : > { %v2665_v44 = vsel %vm2207_vm4, %v2662_v42, %v2664_v43 }
  0x7c   : > { %5031 = vmatmul.mubr.msk.bf16.gmra.mrb[12].mxu1 %vm549_vm2, %v5889_v35 }
  0x7d   : > { %5034 = vmatprep.mubr.msk.bf16.mxu1 %vm549_vm2, %v5905_v51 }
  0x7f   : > { %5199 = vmatmul.mubr.msk.bf16.gmra.mrb[28].mxu0 %vm549_vm2, %v2240_v6  ;;  %v1009_v6 = vrot.slane %v5794_v10, 1  ;;  %v1011_v10 = vrot.slane %v5809_v19, 1 }
  0x80   : > { %5202 = vmatprep.mubr.msk.bf16.mxu0 %vm549_vm2, %v2242_v36  ;;  %v2661_v36 = vsel %vm2207_vm4, %v2658_v17, %v2660_v24  ;;  %v1017_v17 = vrot.slane %v5850_v54, 1  ;;  %v3715_v54 = vld [vmem:[%s6262_s24] sm:$0xff] }
  0x81   : > { %v1010_v18 = vsel %vm1007_vm5, %v1008_v30, %v1009_v6  ;;  %v1014_v19 = vsel %vm1007_vm5, %v1011_v10, %v1013_v23  ;;  %v2670_v30 = vrot.slane %v6247_v16, 2  ;;  %3753 = vperm.xlu0 %5632, %v3715_v54  }
  0x84   : > { %5035 = vmatmul.mubr.msk.bf16.gmra.mrb[16].mxu1 %vm549_vm2, %v5916_v63 }
  0x85   : > { %5038 = vmatprep.mubr.msk.bf16.mxu1 %vm549_vm2, %v5933_v25 }
  0x87   : > { %5203 = vmatmul.mubr.msk.bf16.gmra.mrb[32].mxu0 %vm549_vm2, %v2244_v45  ;;  %v2663_v45 = vsel %vm2207_vm4, %v2660_v24, %v2662_v42  ;;  %v6257_v24 = vld [vmem:[%s5781_s6 + $0x78] sm:$0xff]   ;;  %v3716_v42 = vld [vmem:[%s6262_s24 + $0x8] sm:$0xff] }
  0x88   : > { %5208 = vmatprep.mubr.msk.bf16.mxu0 %vm549_vm2, %v2649_v47  ;;  %v6227_v47 = vld [vmem:[%s5781_s6 + $0x60] sm:$0xff]   ;;  %3758 = vperm.xlu0 %5632, %v3716_v42   ;;  %v2965_v42 = vshll.u32 %v6134_v37, 16 }
  0x8c   : > { %5039 = vmatmul.mubr.msk.bf16.gmra.mrb[20].mxu1 %vm549_vm2, %v5943_v41 }
  0x8d   : > { %5042 = vmatprep.mubr.msk.bf16.mxu1 %vm549_vm2, %v5957_v58 }
  0x8f   : > { %5209 = vmatmul.mubr.msk.bf16.vlgmr.msra.gmra.mrb[0].mxu0 %vm549_vm2, %v2651_v52  ;;  %v6232_v52 = vld [vmem:[%s5781_s6 + $0x68] sm:$0xff]  }
  0x90   : > { %5245 = vmatpush3.bf16.msra.mxu0 %v3186_v62  ;;  %5212 = vmatprep.mubr.msk.bf16.mxu0 %vm549_vm2, %v2653_v14  ;;  %v1012_v62 = vsel %vm1007_vm5, %v1009_v6, %v1011_v10  ;;  %v2666_v14 = vrot.slane %v6227_v47, 2  ;;  %v2668_v33 = vrot.slane %v6232_v52, 2  ;;  %v6278_v10 = vld [vmem:[%s5781_s6 + $0x80] sm:$0xff]  }
  0x91   : > { %5619 = vmatprep.subr.msk.bf16.mxu0 %vm604_vm0, %v6177_v29 }
  0x92   : > { %v2669_v21 = vsel %vm2207_vm4, %v2666_v14, %v2668_v33 }
  0x94   : > { %5043 = vmatmul.mubr.msk.bf16.gmra.mrb[24].mxu1 %vm549_vm2, %v5962_v11 }
  0x95   : > { %5046 = vmatprep.mubr.msk.bf16.mxu1 %vm549_vm2, %v5979_v32 }
  0x97   : > { %5213 = vmatmul.mubr.msk.bf16.gmra.mrb[4].mxu0 %vm549_vm2, %v2655_v34  ;;  %v1015_v34 = vrot.slane %v5841_v48, 1 }
  0x98   : > { %5216 = vmatprep.mubr.msk.bf16.mxu0 %vm549_vm2, %v2657_v5  ;;  %v2667_v5 = vsel %vm2207_vm4, %v2664_v43, %v2666_v14  ;;  %v2671_v43 = vsel %vm2207_vm4, %v2668_v33, %v2670_v30  ;;  %v3718_v14 = vld [vmem:[%s6262_s24 + $0x18] sm:$0xff]  ;;  %v3720_v33 = vld [vmem:[%s6262_s24 + $0x28] sm:$0xff] }
  0x99   : > { %v1016_v48 = vsel %vm1007_vm5, %v1013_v23, %v1015_v34  ;;  %v1018_v6 = vsel %vm1007_vm5, %v1015_v34, %v1017_v17  ;;  %v1023_v34 = vrot.slane %v5905_v51, 1  ;;  %v3723_v51 = vld [vmem:[%s6262_s24 + $0x40] sm:$0xff] }
  0x9c   : > { %5047 = vmatmul.mubr.msk.bf16.gmra.mrb[28].mxu1 %vm549_vm2, %v5985_v40 }
  0x9d   : > { %5050 = vmatprep.mubr.msk.bf16.mxu1 %vm549_vm2, %v6000_v56 }
  0x9f   : > { %5217 = vmatmul.mubr.msk.bf16.gmra.mrb[8].mxu0 %vm549_vm2, %v2659_v49  ;;  %v3717_v49 = vld [vmem:[%s6262_s24 + $0x10] sm:$0xff] }
  0xa0   : > { %5220 = vmatprep.mubr.msk.bf16.mxu0 %vm549_vm2, %v2661_v36  ;;  %v2672_v36 = vrot.slane %v6257_v24, 2  ;;  %3763 = vperm.xlu1 %5633, %v3717_v49   ;;  %v3722_v49 = vld [vmem:[%s6262_s24 + $0x38] sm:$0xff] }
  0xa2   : > { %v2673_v23 = vsel %vm2207_vm4, %v2670_v30, %v2672_v36 }
  0xa4   : > { %5051 = vmatmul.mubr.msk.bf16.gmra.mrb[32].mxu1 %vm549_vm2, %v6007_v4  ;;  %3768 = vperm.xlu1 %5633, %v3718_v14  }
  0xa5   : > { %5056 = vmatprep.mubr.msk.bf16.mxu1 %vm549_vm2, %v1010_v18  ;;  %v1019_v18 = vrot.slane %v5861_v0, 1  ;;  %v3719_v0 = vld [vmem:[%s6262_s24 + $0x20] sm:$0xff] }
  0xa6   : > { %3773 = vperm.xlu0 %5632, %v3719_v0  }
  0xa7   : > { %5221 = vmatmul.mubr.msk.bf16.gmra.mrb[12].mxu0 %vm549_vm2, %v2663_v45  ;;  %v1021_v45 = vrot.slane %v5889_v35, 1 }
  0xa8   : > { %5224 = vmatprep.mubr.msk.bf16.mxu0 %vm549_vm2, %v2665_v44  ;;  %v6283_v44 = vld [vmem:[%s5781_s6 + $0x88] sm:$0xff]   ;;  %3778 = vperm.xlu1 %5633, %v3720_v33   ;;  %v2967_v33 = vrot.slane %v2965_v42, 3  ;;  %v3729_v42 = vld [vmem:[%s6262_s24 + $0x70] sm:$0xff] }
  0xa9   : > { %v1022_v35 = vsel %vm1007_vm5, %v1019_v18, %v1021_v45  ;;  %v1024_v54 = vsel %vm1007_vm5, %v1021_v45, %v1023_v34  ;;  %v3724_v45 = vld [vmem:[%s6262_s24 + $0x48] sm:$0xff] }
  0xaa   : > { %3783 = vperm.xlu0 %5632, %v3721_v61  }
  0xac   : > { %5057 = vmatmul.mubr.msk.bf16.vlgmr.msra.gmra.mrb[0].mxu1 %vm549_vm2, %v1012_v62  ;;  %v1020_v62 = vsel %vm1007_vm5, %v1017_v17, %v1019_v18  ;;  %v6300_v17 = vld [vmem:[%s5781_s6 + $0x90] sm:$0xff]   ;;  %3788 = vperm.xlu1 %5633, %v3722_v49   ;;  %v2970_v18 = vshrl.u32 %v6137_v38, 16  ;;  %v2982_v49 = vshll.u32 %v6150_v46, 16 }
  0xad   : > { %5060 = vmatprep.mubr.msk.bf16.mxu1 %vm549_vm2, %v1014_v19  ;;  %5093 = vmatpush3.bf16.msra.mxu1 %v1539_v39  ;;  %v2674_v19 = vrot.slane %v6278_v10, 2  ;;  %v2676_v39 = vrot.slane %v6283_v44, 2  ;;  %v2678_v30 = vrot.slane %v6300_v17, 2 }
  0xae   : > { %5615 = vmatprep.subr.msk.bf16.mxu1 %vm604_vm0, %v5696_v9  ;;  %v1025_v9 = vrot.slane %v5916_v63, 1  ;;  %3793 = vperm.xlu0 %5632, %v3723_v51   ;;  %v2972_v61 = vrot.slane %v2970_v18, 2  ;;  %v1031_v18 = vrot.slane %v5957_v58, 1  ;;  %v3731_v58 = vld [vmem:[%s6262_s24 + $0x80] sm:$0xff] }
  0xaf   : > { %5225 = vmatmul.mubr.msk.bf16.gmra.mrb[16].mxu0 %vm549_vm2, %v2667_v5  ;;  %v2675_v5 = vsel %vm2207_vm4, %v2672_v36, %v2674_v19  ;;  %v2962_v36 = vshrl.u32 %v6134_v37, 16  ;;  %v2679_v14 = vsel %vm2207_vm4, %v2676_v39, %v2678_v30  ;;  %v5692_v37 = vld [vmem:[%s5781_s6 + $0xa0] ss:$0 sps:$4 sm:$0x33]  }
  0xb0   : > { %5228 = vmatprep.mubr.msk.bf16.mxu0 %vm549_vm2, %v2669_v21  ;;  %v6304_v21 = vld [vmem:[%s5781_s6 + $0x98] sm:$0xff]   ;;  %v1026_v63 = vsel %vm1007_vm5, %v1023_v34, %v1025_v9  ;;  %3798 = vperm.xlu1 %5633, %v3724_v45  }
  0xb4   : > { %5061 = vmatmul.mubr.msk.bf16.gmra.mrb[4].mxu1 %vm549_vm2, %v1016_v48  ;;  %v2677_v48 = vsel %vm2207_vm4, %v2674_v19, %v2676_v39  ;;  %v1029_v19 = vrot.slane %v5943_v41, 1  ;;  %v2682_v39 = vrot.slane %v5692_v37, 2  ;;  %v2979_v41 = vshrl.u32 %v6150_v46, 16 }
  0xb5   : > { %5064 = vmatprep.mubr.msk.bf16.mxu1 %vm549_vm2, %v1018_v6  ;;  %v2680_v6 = vrot.slane %v6304_v21, 2 }
  0xb6   : > { %v2981_v45 = vrot.slane %v2979_v41, 2 }
  0xb7   : > { %5229 = vmatmul.mubr.msk.bf16.gmra.mrb[20].mxu0 %vm549_vm2, %v2671_v43  ;;  %v2973_v43 = vshll.u32 %v6137_v38, 16  ;;  %v2681_v0 = vsel %vm2207_vm4, %v2678_v30, %v2680_v6 }
  0xb8   : > { %5232 = vmatprep.mubr.msk.bf16.mxu0 %vm549_vm2, %v2673_v23  ;;  %v3725_v23 = vld [vmem:[%s6262_s24 + $0x50] sm:$0xff] }
  0xb9   : > { %v2975_v34 = vrot.slane %v2973_v43, 3  ;;  %3803 = vperm.xlu0 %5632, %v3725_v23   ;;  %v2683_v43 = vsel %vm2207_vm4, %v2680_v6, %v2682_v39  ;;  %v2984_v23 = vrot.slane %v2982_v49, 3  ;;  %v3732_v39 = vld [vmem:[%s6262_s24 + $0x88] sm:$0xff] }
  0xbb   : > { %v2976_v30 = vor.u32 %v2975_v34, %v2972_v61  ;;  %v2985_v6 = vor.u32 %v2984_v23, %v2981_v45  ;;  %v3000_v34 = vshll.u32 %v6166_v53, 16  ;;  %v3735_v45 = vld [vmem:[%s6262_s24 + $0xa0] sm:$0xff] }
  0xbc   : > { %5065 = vmatmul.mubr.msk.bf16.gmra.mrb[8].mxu1 %vm549_vm2, %v1020_v62  ;;  %v1027_v62 = vrot.slane %v5933_v25, 1  ;;  %v3727_v25 = vld [vmem:[%s6262_s24 + $0x60] sm:$0xff] }
  0xbd   : > { %5068 = vmatprep.mubr.msk.bf16.mxu1 %vm549_vm2, %v1022_v35  ;;  %v2964_v35 = vrot.slane %v2962_v36, 2  ;;  %v2991_v36 = vshll.u32 %v6154_v50, 16  ;;  %3813 = vperm.xlu0 %5632, %v3727_v25   ;;  %v3009_v25 = vshll.u32 %v6172_v28, 16  ;;  %v2986_v41 = vsel %vm2960_vm6, %v2976_v30, %v2985_v6 }
  0xbf   : > { %5233 = vmatmul.mubr.msk.bf16.gmra.mrb[24].mxu0 %vm549_vm2, %v2675_v5  ;;  %v1028_v5 = vsel %vm1007_vm5, %v1025_v9, %v1027_v62  ;;  %v2968_v51 = vor.u32 %v2967_v33, %v2964_v35  ;;  %v3728_v9 = vld [vmem:[%s6262_s24 + $0x68] sm:$0xff]  ;;  %v2993_v37 = vrot.slane %v2991_v36, 3  ;;  %v1032_v35 = vsel %vm1007_vm5, %v1029_v19, %v1031_v18  ;;  %v3730_v33 = vld [vmem:[%s6262_s24 + $0x78] sm:$0xff] }
  0xc0   : > { %5236 = vmatprep.mubr.msk.bf16.mxu0 %vm549_vm2, %v2677_v48  ;;  %v3726_v48 = vld [vmem:[%s6262_s24 + $0x58] sm:$0xff]  ;;  %v3500_v36 = vsel %vm604_vm0, %v6177_v29, 0 }
  0xc1   : > { %3808 = vperm.xlu1 %5633, %v3726_v48   ;;  %3823 = vperm.xlu0 %5632, %v3729_v42   ;;  %v3006_v48 = vshrl.u32 %v6172_v28, 16 }
  0xc3   : > { %v3008_v42 = vrot.slane %v3006_v48, 2 }
  0xc4   : > { %5069 = vmatmul.mubr.msk.bf16.gmra.mrb[12].mxu1 %vm549_vm2, %v1024_v54  ;;  %v1030_v54 = vsel %vm1007_vm5, %v1027_v62, %v1029_v19  ;;  %v1033_v62 = vrot.slane %v5962_v11, 1  ;;  %v2997_v11 = vshrl.u32 %v6166_v53, 16  ;;  %v3733_v19 = vld [vmem:[%s6262_s24 + $0x90] sm:$0xff] }
  0xc5   : > { %5072 = vmatprep.mubr.msk.bf16.mxu1 %vm549_vm2, %v1026_v63  ;;  %v2988_v63 = vshrl.u32 %v6154_v50, 16  ;;  %3818 = vperm.xlu1 %5633, %v3728_v9  }
  0xc6   : > { %v1034_v61 = vsel %vm1007_vm5, %v1031_v18, %v1033_v62  ;;  %3833 = vperm.xlu0 %5632, %v3731_v58   ;;  %v2999_v49 = vrot.slane %v2997_v11, 2  ;;  %v3011_v18 = vrot.slane %v3009_v25, 3  ;;  %v1041_v11 = vrot.slane %v6007_v4, 1 }
  0xc7   : > { %5237 = vmatmul.mubr.msk.bf16.gmra.mrb[28].mxu0 %vm549_vm2, %v2679_v14  ;;  %v2977_v14 = vsel %vm2960_vm6, %v2968_v51, %v2976_v30  ;;  %v3002_v51 = vrot.slane %v3000_v34, 3  ;;  %v3015_v30 = vshrl.u32 %v6191_v3, 16  ;;  %v3033_v4 = vshrl.u32 %v6209_v13, 16 }
  0xc8   : > { %5240 = vmatprep.mubr.msk.bf16.mxu0 %vm549_vm2, %v2681_v0  ;;  %v2990_v0 = vrot.slane %v2988_v63, 2  ;;  %v1037_v63 = vrot.slane %v5985_v40, 1  ;;  %v3734_v40 = vld [vmem:[%s6262_s24 + $0x98] sm:$0xff] }
  0xc9   : > { %3828 = vperm.xlu1 %5633, %v3730_v33   ;;  %v3003_v29 = vor.u32 %v3002_v51, %v2999_v49  ;;  %v1039_v33 = vrot.slane %v6000_v56, 1  ;;  %v3017_v58 = vrot.slane %v3015_v30, 2  ;;  %v3738_v56 = vld [vmem:[%s6262_s24 + $0xb8] sm:$0xff]  ;;  %v3042_v51 = vshrl.u32 %v6214_v8, 16 }
  0xca   : > { %3843 = vperm.xlu0 %5632, %v3733_v19  }
  0xcc   : > { %5073 = vmatmul.mubr.msk.bf16.gmra.mrb[16].mxu1 %vm549_vm2, %v1028_v5  ;;  %v2994_v5 = vor.u32 %v2993_v37, %v2990_v0  ;;  %v3024_v0 = vshrl.u32 %v6195_v1, 16  ;;  %v3027_v37 = vshll.u32 %v6195_v1, 16 }
  0xcd   : > { %5076 = vmatprep.mubr.msk.bf16.mxu1 %vm549_vm2, %v1030_v54  ;;  %v1035_v54 = vrot.slane %v5979_v32, 1  ;;  %3838 = vperm.xlu1 %5633, %v3732_v39   ;;  %v1040_v39 = vsel %vm1007_vm5, %v1037_v63, %v1039_v33 }
  0xce   : > { %v2995_v9 = vsel %vm2960_vm6, %v2985_v6, %v2994_v5  ;;  %3853 = vperm.xlu0 %5632, %v3735_v45   ;;  %v3026_v48 = vrot.slane %v3024_v0, 2  ;;  %v3029_v25 = vrot.slane %v3027_v37, 3  ;;  %v3742_v37 = vld [vmem:[%s6262_s24 + $0xd8] sm:$0xff] }
  0xcf   : > { %5241 = vmatmul.mubr.msk.bf16.gmra.mrb[32].mxu0 %vm549_vm2, %v2683_v43  ;;  %v1036_v32 = vsel %vm1007_vm5, %v1033_v62, %v1035_v54  ;;  %v3018_v43 = vshll.u32 %v6191_v3, 16  ;;  %v1038_v23 = vsel %vm1007_vm5, %v1035_v54, %v1037_v63  ;;  %v3736_v62 = vld [vmem:[%s6262_s24 + $0xa8] sm:$0xff]  ;;  %v3739_v54 = vld [vmem:[%s6262_s24 + $0xc0] sm:$0xff] }
  0xd0   : > { %5246 = vmatprep.mubr.msk.bf16.mxu0 %vm549_vm2, %v2977_v14  ;;  %v3012_v14 = vor.u32 %v3011_v18, %v3008_v42  ;;  %v3030_v49 = vor.u32 %v3029_v25, %v3026_v48  ;;  %v3740_v63 = vld [vmem:[%s6262_s24 + $0xc8] sm:$0xff]  ;;  %v1043_v18 = vrot.slane %v6030_v27, 1  ;;  %v5698_v48 = vld [vmem:[%s5781_s6 + $0x18] sm:$0xff]  }
  0xd1   : > { %3848 = vperm.xlu1 %5633, %v3734_v40   ;;  %v3020_v6 = vrot.slane %v3018_v43, 3  ;;  %v1447_v43 = vrot.slane %v5812_v20, 1  ;;  %v5697_v40 = vld [vmem:[%s5781_s6 + $0x10] sm:$0xff]   ;;  %v1450_v25 = vrot.slane %v5698_v48, 1  ;;  %v3090_v48 = vshll.u32 %v6278_v10, 16 }
  0xd2   : > { %v3013_v34 = vsel %vm2960_vm6, %v3003_v29, %v3012_v14  ;;  %v1448_v45 = vrot.slane %v5697_v40, 1  ;;  %v1044_v27 = vsel %vm1007_vm5, %v1041_v11, %v1043_v18  ;;  %v3069_v18 = vshrl.u32 %v6247_v16, 16 }
  0xd3   : > { %v3021_v19 = vor.u32 %v3020_v6, %v3017_v58  ;;  %v3060_v6 = vshrl.u32 %v6232_v52, 16  ;;  %v3081_v40 = vshll.u32 %v6257_v24, 16 }
  0xd4   : > { %5077 = vmatmul.mubr.msk.bf16.gmra.mrb[20].mxu1 %vm549_vm2, %v1032_v35  ;;  %v3737_v35 = vld [vmem:[%s6262_s24 + $0xb0] sm:$0xff] }
  0xd5   : > { %5080 = vmatprep.mubr.msk.bf16.mxu1 %vm549_vm2, %v1034_v61  ;;  %v3004_v61 = vsel %vm2960_vm6, %v2994_v5, %v3003_v29  ;;  %3858 = vperm.xlu1 %5633, %v3736_v62   ;;  %v1042_v5 = vsel %vm1007_vm5, %v1039_v33, %v1041_v11  ;;  %v3022_v42 = vsel %vm2960_vm6, %v3012_v14, %v3021_v19  ;;  %v3743_v14 = vld [vmem:[%s6262_s24 + $0xe0] sm:$0xff]  ;;  %v3054_v33 = vshll.u32 %v6227_v47, 16  ;;  %v3744_v11 = vld [vmem:[%s6262_s24 + $0xe8] sm:$0xff] }
  0xd6   : > { %3863 = vperm.xlu0 %5632, %v3737_v35   ;;  %v3031_v29 = vsel %vm2960_vm6, %v3021_v19, %v3030_v49  ;;  %v1449_v62 = vsel %vm1007_vm5, %v1447_v43, %v1448_v45  ;;  %v3051_v35 = vshrl.u32 %v6227_v47, 16  ;;  %v3078_v43 = vshrl.u32 %v6257_v24, 16 }
  0xd7   : > { %5247 = vmatmul.mubr.msk.bf16.vlgmr.msra.gmra.mrb[0].mxu0 %vm549_vm2, %v2986_v41  ;;  %v3036_v41 = vshll.u32 %v6209_v13, 16 }
  0xd8   : > { %5283 = vmatpush3.bf16.msra.mxu0 %v3500_v36  ;;  %5250 = vmatprep.mubr.msk.bf16.mxu0 %vm549_vm2, %v2995_v9  ;;  %v3045_v36 = vshll.u32 %v6214_v8, 16  ;;  %v3741_v9 = vld [vmem:[%s6262_s24 + $0xd0] sm:$0xff]  ;;  %v3053_v19 = vrot.slane %v3051_v35, 2 }
  0xd9   : > { %3868 = vperm.xlu1 %5633, %v3738_v56   ;;  %v3038_v30 = vrot.slane %v3036_v41, 3  ;;  %v3056_v56 = vrot.slane %v3054_v33, 3  ;;  %v3062_v41 = vrot.slane %v3060_v6, 2  ;;  %v3080_v33 = vrot.slane %v3078_v43, 2 }
  0xda   : > { %3873 = vperm.xlu0 %5632, %v3739_v54   ;;  %v3047_v0 = vrot.slane %v3045_v36, 3  ;;  %v5699_v54 = vld [vmem:[%s5781_s6 + $0x20] sm:$0xff]   ;;  %v3746_v36 = vld [vmem:[%s6262_s24 + $0xf8] sm:$0xff]  ;;  %v3083_v6 = vrot.slane %v3081_v40, 3  ;;  %v3108_v43 = vshll.u32 %v6300_v17, 16 }
  0xdc   : > { %5081 = vmatmul.mubr.msk.bf16.gmra.mrb[24].mxu1 %vm549_vm2, %v1036_v32  ;;  %v3035_v32 = vrot.slane %v3033_v4, 2 }
  0xdd   : > { %5084 = vmatprep.mubr.msk.bf16.mxu1 %vm549_vm2, %v1038_v23  ;;  %v3044_v23 = vrot.slane %v3042_v51, 2  ;;  %3878 = vperm.xlu1 %5633, %v3740_v63   ;;  %v3747_v63 = vld [vmem:[%s6262_s24 + $0x100] sm:$0xff] }
  0xde   : > { %3883 = vperm.xlu0 %5632, %v3741_v9   ;;  %v3039_v20 = vor.u32 %v3038_v30, %v3035_v32  ;;  %v1451_v9 = vsel %vm1007_vm5, %v1448_v45, %v1450_v25  ;;  %v3072_v32 = vshll.u32 %v6247_v16, 16  ;;  %v3748_v45 = vld [vmem:[%s6262_s24 + $0x108] sm:$0xff] }
  0xdf   : > { %5251 = vmatmul.mubr.msk.bf16.gmra.mrb[4].mxu0 %vm549_vm2, %v3004_v61  ;;  %v3048_v58 = vor.u32 %v3047_v0, %v3044_v23  ;;  %v3063_v61 = vshll.u32 %v6232_v52, 16  ;;  %v5700_v23 = vld [vmem:[%s5781_s6 + $0x28] sm:$0xff]  }
  0xe0   : > { %5254 = vmatprep.mubr.msk.bf16.mxu0 %vm549_vm2, %v3013_v34  ;;  %v3745_v34 = vld [vmem:[%s6262_s24 + $0xf0] sm:$0xff]  ;;  %v1454_v0 = vrot.slane %v5700_v23, 1  ;;  %v5704_v23 = vld [vmem:[%s5781_s6 + $0x48] sm:$0xff]  }
  0xe1   : > { %3888 = vperm.xlu1 %5633, %v3742_v37   ;;  %v3049_v4 = vsel %vm2960_vm6, %v3039_v20, %v3048_v58  ;;  %v3065_v51 = vrot.slane %v3063_v61, 3  ;;  %v3750_v61 = vld [vmem:[%s6262_s24 + $0x118] sm:$0xff] }
  0xe2   : > { %3893 = vperm.xlu0 %5632, %v3743_v14   ;;  %v3071_v14 = vrot.slane %v3069_v18, 2 }
  0xe3   : > { %v3066_v30 = vor.u32 %v3065_v51, %v3062_v41  ;;  %v3092_v41 = vrot.slane %v3090_v48, 3  ;;  %v5703_v51 = vld [vmem:[%s5781_s6 + $0x40] sm:$0xff]  }
  0xe4   : > { %5085 = vmatmul.mubr.msk.bf16.gmra.mrb[28].mxu1 %vm549_vm2, %v1040_v39  ;;  %v3040_v39 = vsel %vm2960_vm6, %v3030_v49, %v3039_v20  ;;  %v3057_v49 = vor.u32 %v3056_v56, %v3053_v19  ;;  %v5701_v20 = vld [vmem:[%s5781_s6 + $0x30] sm:$0xff]   ;;  %v3099_v19 = vshll.u32 %v6283_v44, 16  ;;  %v5702_v56 = vld [vmem:[%s5781_s6 + $0x38] sm:$0xff]  }
  0xe5   : > { %5088 = vmatprep.mubr.msk.bf16.mxu1 %vm549_vm2, %v1042_v5  ;;  %v1452_v5 = vrot.slane %v5699_v54, 1  ;;  %3898 = vperm.xlu1 %5633, %v3744_v11   ;;  %v1458_v54 = vrot.slane %v5702_v56, 1 }
  0xe6   : > { %3903 = vperm.xlu0 %5632, %v3745_v34   ;;  %v3058_v37 = vsel %vm2960_vm6, %v3048_v58, %v3057_v49  ;;  %v3067_v35 = vsel %vm2960_vm6, %v3057_v49, %v3066_v30  ;;  %v3087_v34 = vshrl.u32 %v6278_v10, 16  ;;  %v3101_v49 = vrot.slane %v3099_v19, 3  ;;  %v5706_v19 = vld [vmem:[%s5781_s6 + $0x58] sm:$0xff]  }
  0xe7   : > { %5255 = vmatmul.mubr.msk.bf16.gmra.mrb[8].mxu0 %vm549_vm2, %v3022_v42  ;;  %v1453_v42 = vsel %vm1007_vm5, %v1450_v25, %v1452_v5  ;;  %v1455_v11 = vsel %vm1007_vm5, %v1452_v5, %v1454_v0  ;;  %v3084_v25 = vor.u32 %v3083_v6, %v3080_v33  ;;  %v1466_v56 = vrot.slane %v5706_v19, 1 }
  0xe8   : > { %5258 = vmatprep.mubr.msk.bf16.mxu0 %vm549_vm2, %v3031_v29  ;;  %v3749_v29 = vld [vmem:[%s6262_s24 + $0x110] sm:$0xff]  ;;  %v1869_v19 = vshrl.u32 %v6076_v57, 16 }
  0xe9   : > { %3908 = vperm.xlu1 %5633, %v3746_v36   ;;  %v1460_v36 = vrot.slane %v5703_v51, 1 }
  0xea   : > { %3913 = vperm.xlu0 %5632, %v3747_v63  }
  0xec   : > { %5089 = vmatmul.mubr.msk.bf16.gmra.mrb[32].mxu1 %vm549_vm2, %v1044_v27  ;;  %v3074_v27 = vrot.slane %v3072_v32, 3  ;;  %v1461_v32 = vsel %vm1007_vm5, %v1458_v54, %v1460_v36 }
  0xed   : > { %5094 = vmatprep.mubr.msk.bf16.mxu1 %vm549_vm2, %v1449_v62  ;;  %v1456_v62 = vrot.slane %v5701_v20, 1  ;;  %3918 = vperm.xlu1 %5633, %v3748_v45   ;;  %v3114_v45 = vshrl.u32 %v6304_v21, 16  ;;  %v5705_v20 = vld [vmem:[%s5781_s6 + $0x50] sm:$0xff]  }
  0xee   : > { %3923 = vperm.xlu0 %5632, %v3749_v29   ;;  %v3117_v29 = vshll.u32 %v6304_v21, 16 }
  0xef   : > { %5259 = vmatmul.mubr.msk.bf16.gmra.mrb[12].mxu0 %vm549_vm2, %v3040_v39  ;;  %v1457_v58 = vsel %vm1007_vm5, %v1454_v0, %v1456_v62  ;;  %v3096_v39 = vshrl.u32 %v6283_v44, 16  ;;  %v1462_v0 = vrot.slane %v5704_v23, 1  ;;  %v3116_v6 = vrot.slane %v3114_v45, 2 }
  0xf0   : > { %5262 = vmatprep.mubr.msk.bf16.mxu0 %vm549_vm2, %v3049_v4  ;;  %v3089_v4 = vrot.slane %v3087_v34, 2  ;;  %v1474_v23 = vrot.slane %v6094_v7, 1 }
  0xf1   : > { %3928 = vperm.xlu1 %5633, %v3750_v61   ;;  %v3119_v61 = vrot.slane %v3117_v29, 3  ;;  %v3413_v29 = vrot.slane %v6154_v50, 3  ;;  %v3415_v50 = vrot.slane %v6166_v53, 3 }
  0xf2   : > { %v3093_v18 = vor.u32 %v3092_v41, %v3089_v4  ;;  %v1468_v41 = vrot.slane %v6057_v55, 1 }
  0xf4   : > { %5095 = vmatmul.mubr.msk.bf16.vlgmr.msra.gmra.mrb[0].mxu1 %vm549_vm2, %v1451_v9  ;;  %v3098_v9 = vrot.slane %v3096_v39, 2  ;;  %v3401_v39 = vld [vmem:[%s5781_s6 + $0x10] sm:$0x8] }
  0xf5   : > { %5098 = vmatprep.mubr.msk.bf16.mxu1 %vm549_vm2, %v1453_v42  ;;  %5321 = vmatpush3.bf16.msra.mxu1 %v5763_v2  ;;  %v3075_v2 = vor.u32 %v3074_v27, %v3071_v14  ;;  %v1459_v42 = vsel %vm1007_vm5, %v1456_v62, %v1458_v54  ;;  %v3110_v27 = vrot.slane %v3108_v43, 3  ;;  %v1464_v62 = vrot.slane %v5705_v20, 1 }
  0xf6   : > { %v3102_v40 = vor.u32 %v3101_v49, %v3098_v9  ;;  %v1469_v49 = vsel %vm1007_vm5, %v1466_v56, %v1468_v41  ;;  %v3417_v20 = vrot.slane %v6172_v28, 3 }
  0xf7   : > { %5263 = vmatmul.mubr.msk.bf16.gmra.mrb[16].mxu0 %vm549_vm2, %v3058_v37  ;;  %v3076_v5 = vsel %vm2960_vm6, %v3066_v30, %v3075_v2  ;;  %v3085_v63 = vsel %vm2960_vm6, %v3075_v2, %v3084_v25  ;;  %v3105_v30 = vshrl.u32 %v6300_v17, 16  ;;  %v3094_v37 = vsel %vm2960_vm6, %v3084_v25, %v3093_v18 }
  0xf8   : > { %5266 = vmatprep.mubr.msk.bf16.mxu0 %vm549_vm2, %v3067_v35  ;;  %v6469_v35 = vld [vmem:[%s5781_s6 + $0xa0] ss:$0 sps:$4 sm:$0x77]   ;;  %v3103_v33 = vsel %vm2960_vm6, %v3093_v18, %v3102_v40  ;;  %v3120_v25 = vor.u32 %v3119_v61, %v3116_v6  ;;  %v3409_v18 = vrot.slane %v6137_v38, 3  ;;  %v3411_v38 = vrot.slane %v6150_v46, 3 }
  0xf9   : > { %v3107_v14 = vrot.slane %v3105_v30, 2  ;;  %v3123_v34 = vshrl.u32 %v6469_v35, 16  ;;  %v3126_v48 = vshll.u32 %v6469_v35, 16  ;;  %v1472_v30 = vrot.slane %v6082_v60, 1 }
  0xfa   : > { %v1480_v6 = vrot.slane %v6114_v26, 1  ;;  %v1860_v61 = vshrl.u32 %v6057_v55, 16  ;;  %v3418_v53 = vsel %vm3407_vm7, %v3415_v50, %v3417_v20 }
  0xfb   : > { %v3111_v2 = vor.u32 %v3110_v27, %v3107_v14  ;;  %v3128_v4 = vrot.slane %v3126_v48, 3  ;;  %v3414_v14 = vsel %vm3407_vm7, %v3411_v38, %v3413_v29  ;;  %v1475_v46 = vsel %vm1007_vm5, %v1472_v30, %v1474_v23 }
  0xfc   : > { %5099 = vmatmul.mubr.msk.bf16.gmra.mrb[4].mxu1 %vm549_vm2, %v1455_v11  ;;  %v1463_v11 = vsel %vm1007_vm5, %v1460_v36, %v1462_v0  ;;  %v4607_v36 = vcombine.low %v3401_v39, %v6124_v31  ;;  %v1862_v48 = vrot.slane %v1860_v61, 1  ;;  %v3421_v39 = vrot.slane %v6195_v1, 3 }
  0xfd   : > { %5102 = vmatprep.mubr.msk.bf16.mxu1 %vm549_vm2, %v1457_v58  ;;  %v1465_v58 = vsel %vm1007_vm5, %v1462_v0, %v1464_v62  ;;  %v3112_v54 = vsel %vm2960_vm6, %v3102_v40, %v3111_v2  ;;  %v3121_v51 = vsel %vm2960_vm6, %v3111_v2, %v3120_v25  ;;  %v3412_v0 = vsel %vm3407_vm7, %v3409_v18, %v3411_v38  ;;  %v5695_v2 = vld [vmem:[%s5781_s6 + $0x98] ss:$0 sps:$4 sm:$0x11]  }
  0xff   : > { %5267 = vmatmul.mubr.msk.bf16.gmra.mrb[20].mxu0 %vm549_vm2, %v3076_v5  ;;  %v3125_v5 = vrot.slane %v3123_v34, 2 }
 0x100   : > { %5270 = vmatprep.mubr.msk.bf16.mxu0 %vm549_vm2, %v3085_v63  ;;  %v1467_v63 = vsel %vm1007_vm5, %v1464_v62, %v1466_v56  ;;  %v1478_v62 = vrot.slane %v6110_v22, 1  ;;  %v1872_v56 = vshll.u32 %v6076_v57, 16 }
 0x101   : > { %v3129_v9 = vor.u32 %v3128_v4, %v3125_v5  ;;  %v1881_v4 = vshll.u32 %v6082_v60, 16 }
 0x102   : > { %v1481_v34 = vsel %vm1007_vm5, %v1478_v62, %v1480_v6 }
 0x103   : > { %v3130_v31 = vsel %vm2960_vm6, %v3120_v25, %v3129_v9 }
 0x104   : > { %5103 = vmatmul.mubr.msk.bf16.gmra.mrb[8].mxu1 %vm549_vm2, %v1459_v42  ;;  %v3408_v42 = vrot.slane %v4607_v36, 3  ;;  %v1874_v36 = vrot.slane %v1872_v56, 2 }
 0x105   : > { %5106 = vmatprep.mubr.msk.bf16.mxu1 %vm549_vm2, %v1461_v32  ;;  %v1470_v32 = vrot.slane %v6076_v57, 1 }
 0x106   : > { %v3410_v43 = vsel %vm3407_vm7, %v3408_v42, %v3409_v18  ;;  %v3425_v42 = vrot.slane %v6214_v8, 3  ;;  %v1887_v18 = vshrl.u32 %v6094_v7, 16 }
 0x107   : > { %5271 = vmatmul.mubr.msk.bf16.gmra.mrb[24].mxu0 %vm549_vm2, %v3094_v37  ;;  %v1471_v40 = vsel %vm1007_vm5, %v1468_v41, %v1470_v32  ;;  %v1473_v45 = vsel %vm1007_vm5, %v1470_v32, %v1472_v30  ;;  %v1476_v37 = vrot.slane %v6098_v12, 1  ;;  %v1890_v32 = vshll.u32 %v6094_v7, 16 }
 0x108   : > { %5274 = vmatprep.mubr.msk.bf16.mxu0 %vm549_vm2, %v3103_v33  ;;  %v3416_v33 = vsel %vm3407_vm7, %v3413_v29, %v3415_v50 }
 0x109   : > { %v1477_v27 = vsel %vm1007_vm5, %v1474_v23, %v1476_v37  ;;  %v1479_v28 = vsel %vm1007_vm5, %v1476_v37, %v1478_v62  ;;  %v1892_v38 = vrot.slane %v1890_v32, 2  ;;  %v1905_v37 = vshrl.u32 %v6110_v22, 16 }
 0x10b   : > { %v1907_v62 = vrot.slane %v1905_v37, 1 }
 0x10c   : > { %5107 = vmatmul.mubr.msk.bf16.gmra.mrb[12].mxu1 %vm549_vm2, %v1463_v11  ;;  %v1863_v11 = vshll.u32 %v6057_v55, 16  ;;  %v1482_v55 = vrot.slane %v5695_v2, 1  ;;  %v1926_v2 = vshll.u32 %v6130_v59, 16 }
 0x10d   : > { %5110 = vmatprep.mubr.msk.bf16.mxu1 %vm549_vm2, %v1465_v58  ;;  %v3419_v58 = vrot.slane %v6191_v3, 3  ;;  %v1878_v3 = vshrl.u32 %v6082_v60, 16 }
 0x10e   : > { %v1865_v25 = vrot.slane %v1863_v11, 2  ;;  %v1483_v1 = vsel %vm1007_vm5, %v1480_v6, %v1482_v55  ;;  %v3431_v6 = vrot.slane %v6247_v16, 3 }
 0x10f   : > { %5275 = vmatmul.mubr.msk.bf16.gmra.mrb[28].mxu0 %vm549_vm2, %v3112_v54  ;;  %v3420_v54 = vsel %vm3407_vm7, %v3417_v20, %v3419_v58  ;;  %v3422_v41 = vsel %vm3407_vm7, %v3419_v58, %v3421_v39  ;;  %v1880_v9 = vrot.slane %v1878_v3, 1  ;;  %v3441_v3 = vrot.slane %v6304_v21, 3 }
 0x110   : > { %5278 = vmatprep.mubr.msk.bf16.mxu0 %vm549_vm2, %v3121_v51  ;;  %v1866_v5 = vor.u32 %v1865_v25, %v1862_v48  ;;  %v1871_v51 = vrot.slane %v1869_v19, 1  ;;  %v3437_v19 = vrot.slane %v6283_v44, 3 }
 0x112   : > { %v1867_v57 = vsel %vm1760_vm3, %v5971_v15, %v1866_v5  ;;  %v1875_v60 = vor.u32 %v1874_v36, %v1871_v51  ;;  %v1899_v15 = vshll.u32 %v6098_v12, 16 }
 0x114   : > { %5111 = vmatmul.mubr.msk.bf16.gmra.mrb[16].mxu1 %vm549_vm2, %v1467_v63  ;;  %v3423_v63 = vrot.slane %v6209_v13, 3  ;;  %v1896_v13 = vshrl.u32 %v6098_v12, 16  ;;  %v1876_v8 = vsel %vm1760_vm3, %v1866_v5, %v1875_v60  ;;  %v1901_v23 = vrot.slane %v1899_v15, 2 }
 0x115   : > { %5114 = vmatprep.mubr.msk.bf16.mxu1 %vm549_vm2, %v1469_v49  ;;  %v1883_v49 = vrot.slane %v1881_v4, 2 }
 0x116   : > { %v1898_v29 = vrot.slane %v1896_v13, 1 }
 0x117   : > { %5279 = vmatmul.mubr.msk.bf16.gmra.mrb[32].mxu0 %vm549_vm2, %v3130_v31  ;;  %v3424_v31 = vsel %vm3407_vm7, %v3421_v39, %v3423_v63  ;;  %v1884_v30 = vor.u32 %v1883_v49, %v1880_v9  ;;  %v3435_v39 = vrot.slane %v6278_v10, 3  ;;  %v3439_v10 = vrot.slane %v6300_v17, 3  ;;  %v3754_v49 = vpop.permute.xlu0 %3753 }
 0x118   : > { %5284 = vmatprep.mubr.msk.bf16.mxu0 %vm549_vm2, %v3410_v43  ;;  %v3426_v43 = vsel %vm3407_vm7, %v3423_v63, %v3425_v42  ;;  %v1902_v50 = vor.u32 %v1901_v23, %v1898_v29 }
 0x119   : > { %v1885_v7 = vsel %vm1760_vm3, %v1875_v60, %v1884_v30  ;;  %v3440_v44 = vsel %vm3407_vm7, %v3437_v19, %v3439_v10  ;;  %v3442_v4 = vsel %vm3407_vm7, %v3439_v10, %v3441_v3 }
 0x11b   : > { %v3759_v32 = vpop.permute.xlu0 %3758 }
 0x11c   : > { %5115 = vmatmul.mubr.msk.bf16.gmra.mrb[20].mxu1 %vm549_vm2, %v1471_v40  ;;  %v1889_v40 = vrot.slane %v1887_v18, 1 }
 0x11d   : > { %5118 = vmatprep.mubr.msk.bf16.mxu1 %vm549_vm2, %v1473_v45  ;;  %v3427_v45 = vrot.slane %v6227_v47, 3  ;;  %v1914_v47 = vshrl.u32 %v6114_v26, 16 }
 0x11e   : > { %v1893_v12 = vor.u32 %v1892_v38, %v1889_v40 }
 0x11f   : > { %5285 = vmatmul.mubr.msk.bf16.vlgmr.msra.gmra.mrb[0].mxu0 %vm549_vm2, %v3412_v0  ;;  %v3429_v0 = vrot.slane %v6232_v52, 3  ;;  %v1916_v61 = vrot.slane %v1914_v47, 1  ;;  %v3764_v60 = vpop.permute.xlu1 %3763 }
 0x120   : > { %5288 = vmatprep.mubr.msk.bf16.mxu0 %vm549_vm2, %v3414_v14  ;;  %v1908_v14 = vshll.u32 %v6110_v22, 16  ;;  %v1894_v52 = vsel %vm1760_vm3, %v1884_v30, %v1893_v12  ;;  %v1903_v22 = vsel %vm1760_vm3, %v1893_v12, %v1902_v50 }
 0x121   : > { %v3430_v20 = vsel %vm3407_vm7, %v3427_v45, %v3429_v0  ;;  %v3432_v58 = vsel %vm3407_vm7, %v3429_v0, %v3431_v6 }
 0x123   : > { %v3769_v30 = vpop.permute.xlu1 %3768 }
 0x124   : > { %5119 = vmatmul.mubr.msk.bf16.gmra.mrb[24].mxu1 %vm549_vm2, %v1475_v46  ;;  %v3428_v46 = vsel %vm3407_vm7, %v3425_v42, %v3427_v45 }
 0x125   : > { %5122 = vmatprep.mubr.msk.bf16.mxu1 %vm549_vm2, %v1477_v27  ;;  %v1917_v27 = vshll.u32 %v6114_v26, 16  ;;  %v3774_v15 = vpop.permute.xlu0 %3773 }
 0x127   : > { %5289 = vmatmul.mubr.msk.bf16.gmra.mrb[4].mxu0 %vm549_vm2, %v3416_v33  ;;  %v1910_v33 = vrot.slane %v1908_v14, 2  ;;  %v1919_v11 = vrot.slane %v1917_v27, 2 }
 0x128   : > { %5292 = vmatprep.mubr.msk.bf16.mxu0 %vm549_vm2, %v3418_v53  ;;  %v3433_v53 = vrot.slane %v6257_v24, 3  ;;  %v1928_v24 = vrot.slane %v1926_v2, 2 }
 0x129   : > { %v1911_v26 = vor.u32 %v1910_v33, %v1907_v62 }
 0x12a   : > { %v3434_v16 = vsel %vm3407_vm7, %v3431_v6, %v3433_v53  ;;  %v3436_v56 = vsel %vm3407_vm7, %v3433_v53, %v3435_v39 }
 0x12b   : > { %v1912_v48 = vsel %vm1760_vm3, %v1902_v50, %v1911_v26 }
 0x12c   : > { %5123 = vmatmul.mubr.msk.bf16.gmra.mrb[28].mxu1 %vm549_vm2, %v1479_v28  ;;  %v1923_v28 = vshrl.u32 %v6130_v59, 16 }
 0x12d   : > { %5126 = vmatprep.mubr.msk.bf16.mxu1 %vm549_vm2, %v1481_v34  ;;  %v1920_v34 = vor.u32 %v1919_v11, %v1916_v61 }
 0x12e   : > { %v1925_v25 = vrot.slane %v1923_v28, 1 }
 0x12f   : > { %5293 = vmatmul.mubr.msk.bf16.gmra.mrb[8].mxu0 %vm549_vm2, %v3420_v54  ;;  %v1921_v55 = vsel %vm1760_vm3, %v1911_v26, %v1920_v34  ;;  %v3438_v54 = vsel %vm3407_vm7, %v3435_v39, %v3437_v19 }
 0x130   : > { %5296 = vmatprep.mubr.msk.bf16.mxu0 %vm549_vm2, %v3422_v41  ;;  %v1929_v59 = vor.u32 %v1928_v24, %v1925_v25  ;;  %v3443_v41 = vrot.slane %v6469_v35, 3 }
 0x132   : > { %v1930_v5 = vsel %vm1760_vm3, %v1920_v34, %v1929_v59 }
 0x134   : > { %5127 = vmatmul.mubr.msk.bf16.gmra.mrb[32].mxu1 %vm549_vm2, %v1483_v1  ;;  %v3444_v1 = vsel %vm3407_vm7, %v3441_v3, %v3443_v41 }
 0x135   : > { %5152 = vmatprep.mubr.msk.bf16.mxu1 %vm549_vm2, %v1867_v57 }
 0x137   : > { %5297 = vmatmul.mubr.msk.bf16.gmra.mrb[12].mxu0 %vm549_vm2, %v3424_v31 }
 0x138   : > { %5300 = vmatprep.mubr.msk.bf16.mxu0 %vm549_vm2, %v3426_v43 }
 0x13c   : > { %5153 = vmatmul.mubr.msk.bf16.vlgmr.msra.gmra.mrb[20].mxu1 %vm549_vm2, %v1876_v8  ;;  %v3779_v8 = vpop.permute.xlu1 %3778 }
 0x13d   : > { %5156 = vmatprep.mubr.msk.bf16.mxu1 %vm549_vm2, %v1885_v7  ;;  %v3784_v7 = vpop.permute.xlu0 %3783 }
 0x13f   : > { %5301 = vmatmul.mubr.msk.bf16.gmra.mrb[16].mxu0 %vm549_vm2, %v3428_v46 }
 0x140   : > { %5304 = vmatprep.mubr.msk.bf16.mxu0 %vm549_vm2, %v3430_v20  ;;  %v3789_v29 = vpop.permute.xlu1 %3788 }
 0x141   : > { %v6626_v37 = vpop.permute.xlu0 %3793 }
 0x144   : > { %5157 = vmatmul.mubr.msk.bf16.gmra.mrb[24].mxu1 %vm549_vm2, %v1894_v52  ;;  %v6630_v46 = vpop.permute.xlu1 %3798 }
 0x145   : > { %5160 = vmatprep.mubr.msk.bf16.mxu1 %vm549_vm2, %v1903_v22  ;;  %v6632_v50 = vpop.permute.xlu0 %3803 }
 0x147   : > { %5305 = vmatmul.mubr.msk.bf16.gmra.mrb[20].mxu0 %vm549_vm2, %v3432_v58 }
 0x148   : > { %5308 = vmatprep.mubr.msk.bf16.mxu0 %vm549_vm2, %v3434_v16  ;;  %v6634_v47 = vpop.permute.xlu1 %3808 }
 0x149   : > { %v6637_v62 = vpop.permute.xlu0 %3813 }
 0x14c   : > { %5161 = vmatmul.mubr.msk.bf16.gmra.mrb[28].mxu1 %vm549_vm2, %v1912_v48  ;;  %v6639_v11 = vpop.permute.xlu1 %3818 }
 0x14d   : > { %5164 = vmatprep.mubr.msk.bf16.mxu1 %vm549_vm2, %v1921_v55  ;;  %v6647_v48 = vpop.permute.xlu0 %3823 }
 0x14f   : > { %5309 = vmatmul.mubr.msk.bf16.gmra.mrb[24].mxu0 %vm549_vm2, %v3436_v56 }
 0x150   : > { %5312 = vmatprep.mubr.msk.bf16.mxu0 %vm549_vm2, %v3438_v54  ;;  %v6650_v56 = vpop.permute.xlu1 %3828 }
 0x154   : > { %5165 = vmatmul.mubr.msk.bf16.gmra.mrb[32].mxu1 %vm549_vm2, %v1930_v5 }
 0x157   : > { %5313 = vmatmul.mubr.msk.bf16.gmra.mrb[28].mxu0 %vm549_vm2, %v3440_v44 }
 0x158   : > { %5316 = vmatprep.mubr.msk.bf16.mxu0 %vm549_vm2, %v3442_v4 }
 0x15f   : > { %5317 = vmatmul.mubr.msk.bf16.gmra.mrb[32].mxu0 %vm549_vm2, %v3444_v1 }
 0x1c7   : > { %v5096_v51 = vpop.f32.mrb[0].mxu1 }
 0x1c8   : > { %v1575_v17 = vpop.f32.mrb[1].mxu1 }
 0x1c9   : > { %v5097_v36 = vpop.f32.mrb[2].mxu1 }
 0x1ca   : > { %v1578_v21 = vpop.f32.mrb[3].mxu1 }
 0x1cf   : > { %v5100_v63 = vpop.f32.mrb[4].mxu1 }
 0x1d0   : > { %v1591_v57 = vpop.f32.mrb[5].mxu1 }
 0x1d1   : > { %v5101_v9 = vpop.f32.mrb[6].mxu1 }
 0x1d2   : > { %v6602_v42 = vpop.f32.mrb[7].mxu1 }
 0x1d7   : > { %v6604_v18 = vpop.f32.mrb[8].mxu1 }
 0x1d8   : > { %v6606_v31 = vpop.f32.mrb[9].mxu1 }
 0x1d9   : > { %v6608_v35 = vpop.f32.mrb[10].mxu1 }
 0x1da   : > { %v6610_v13 = vpop.f32.mrb[11].mxu1 }
 0x1df   : > { %v6612_v43 = vpop.f32.mrb[12].mxu1 }
 0x1e0   : > { %v6614_v40 = vpop.f32.mrb[13].mxu1 }
 0x1e1   : > { %v6616_v38 = vpop.f32.mrb[14].mxu1 }
 0x1e2   : > { %v6618_v45 = vpop.f32.mrb[15].mxu1 }
 0x1e7   : > { %v6620_v23 = vpop.f32.mrb[16].mxu1 }
 0x1e8   : > { %v6622_v0 = vpop.f32.mrb[17].mxu1 }
 0x1e9   : > { %v6624_v12 = vpop.f32.mrb[18].mxu1 }
 0x1ea   : > { %v6628_v14 = vpop.f32.mrb[19].mxu1 }
 0x1f2   : > { %v5286_v27 = vpop.f32.mrb[0].mxu0 }
 0x1f3   : > { %v5322_v20 = vadd.f32 %v5286_v27, %v5096_v51  ;;  %v3536_v52 = vpop.f32.mrb[1].mxu0 }
 0x1f4   : > { %v5323_v33 = vadd.f32 %v3536_v52, %v1575_v17  ;;  %v5287_v6 = vpop.f32.mrb[2].mxu0 }
 0x1f5   : > { %v5324_v22 = vadd.f32 %v5287_v6, %v5097_v36  ;;  %v3539_v61 = vpop.f32.mrb[3].mxu0  ;;  %v3933_v2 = vmul.f32 %v5322_v20, %v3764_v60  ;;  %v6653_v60 = vpop.permute.xlu0 %3833 }
 0x1f6   : > { %v3931_v53 = vmul.f32 %v5323_v33, %v3754_v49  ;;  %v5325_v26 = vadd.f32 %v3539_v61, %v1578_v21 }
 0x1f7   : > { %v4708_v28 = vpack.c.bf16 %v5324_v22, %v5322_v20  ;;  %v3934_v16 = vmul.f32 %v5324_v22, %v3769_v30  ;;  %v4005_v54 = vmul.f32 %v5322_v20, %v3933_v2 }
 0x1f8   : > { %v3932_v58 = vmul.f32 %v5325_v26, %v3759_v32  ;;  %v4703_v34 = vpack.c.bf16 %v5325_v26, %v5323_v33  ;;  %v4003_v25 = vmul.f32 %v5323_v33, %v3931_v53  ;;  %v6656_v33 = vpop.permute.xlu1 %3838 }
 0x1f9   : > { %4790 = vst [vmem:[%s6644_s28 + $0x8] sm:$0xff] %v4708_v28   ;;  %v4006_v4 = vmul.f32 %v5324_v22, %v3934_v16 }
 0x1fa   : > { %v3967_v24 = vadd.f32 %v3932_v58, %v3931_v53  ;;  %v4004_v39 = vmul.f32 %v5325_v26, %v3932_v58  ;;  %4704 = vst [vmem:[%s6644_s28] sm:$0xff] %v4703_v34   ;;  %v5290_v55 = vpop.f32.mrb[4].mxu0  ;;  %v6662_v34 = vpop.permute.xlu0 %3843 }
 0x1fb   : > { %v5326_v19 = vadd.f32 %v5290_v55, %v5100_v63  ;;  %v3552_v59 = vpop.f32.mrb[5].mxu0 }
 0x1fc   : > { %v3968_v5 = vadd.f32 %v3967_v24, %v3933_v2  ;;  %v4039_v10 = vadd.f32 %v4004_v39, %v4003_v25  ;;  %v5327_v3 = vadd.f32 %v3552_v59, %v1591_v57  ;;  %v5291_v44 = vpop.f32.mrb[6].mxu0 }
 0x1fd   : > { %v5328_v41 = vadd.f32 %v5291_v44, %v5101_v9  ;;  %v3555_v1 = vpop.f32.mrb[7].mxu0  ;;  %v3937_v49 = vmul.f32 %v5326_v19, %v3784_v7 }
 0x1fe   : > { %v4040_v51 = vadd.f32 %v4039_v10, %v4005_v54  ;;  %v3935_v17 = vmul.f32 %v5327_v3, %v3774_v15  ;;  %v3969_v36 = vadd.f32 %v3968_v5, %v3934_v16  ;;  %v5329_v21 = vadd.f32 %v3555_v1, %v6602_v42 }
 0x1ff   : > { %v4718_v63 = vpack.c.bf16 %v5328_v41, %v5326_v19  ;;  %v3938_v57 = vmul.f32 %v5328_v41, %v3789_v29  ;;  %v4009_v61 = vmul.f32 %v5326_v19, %v3937_v49  ;;  %v6667_v19 = vpop.permute.xlu1 %3848 }
 0x200   : > { %v3970_v32 = vadd.f32 %v3969_v36, %v3935_v17  ;;  %v4007_v30 = vmul.f32 %v5327_v3, %v3935_v17  ;;  %v4041_v27 = vadd.f32 %v4040_v51, %v4006_v4  ;;  %v3936_v20 = vmul.f32 %v5329_v21, %v3779_v8 }
 0x201   : > { %4792 = vst [vmem:[%s6644_s28 + $0x18] sm:$0xff] %v4718_v63   ;;  %v4713_v52 = vpack.c.bf16 %v5329_v21, %v5327_v3  ;;  %v4010_v8 = vmul.f32 %v5328_v41, %v3938_v57  ;;  %v6674_v41 = vpop.permute.xlu0 %3853 }
 0x202   : > { %v4042_v9 = vadd.f32 %v4041_v27, %v4007_v30  ;;  %v3971_v6 = vadd.f32 %v3970_v32, %v3936_v20  ;;  %v4008_v15 = vmul.f32 %v5329_v21, %v3936_v20  ;;  %v5294_v22 = vpop.f32.mrb[8].mxu0 }
 0x203   : > { %4791 = vst [vmem:[%s6644_s28 + $0x10] sm:$0xff] %v4713_v52   ;;  %v5330_v42 = vadd.f32 %v5294_v22, %v6604_v18  ;;  %v3568_v7 = vpop.f32.mrb[9].mxu0  ;;  %v6678_v32 = vpop.permute.xlu1 %3858 }
 0x204   : > { %v3972_v53 = vadd.f32 %v3971_v6, %v3937_v49  ;;  %v4043_v26 = vadd.f32 %v4042_v9, %v4008_v15  ;;  %v5331_v28 = vadd.f32 %v3568_v7, %v6606_v31  ;;  %v5295_v2 = vpop.f32.mrb[10].mxu0 }
 0x205   : > { %v5332_v29 = vadd.f32 %v5295_v2, %v6608_v35  ;;  %v3571_v58 = vpop.f32.mrb[11].mxu0  ;;  %v3941_v39 = vmul.f32 %v5330_v42, %v6632_v50 }
 0x206   : > { %v4044_v16 = vadd.f32 %v4043_v26, %v4009_v61  ;;  %v3939_v25 = vmul.f32 %v5331_v28, %v6626_v37  ;;  %v3973_v24 = vadd.f32 %v3972_v53, %v3938_v57  ;;  %v5333_v18 = vadd.f32 %v3571_v58, %v6610_v13 }
 0x207   : > { %v4728_v55 = vpack.c.bf16 %v5332_v29, %v5330_v42  ;;  %v3942_v5 = vmul.f32 %v5332_v29, %v6634_v47  ;;  %v4013_v1 = vmul.f32 %v5330_v42, %v3941_v39 }
 0x208   : > { %v3974_v31 = vadd.f32 %v3973_v24, %v3939_v25  ;;  %v4011_v59 = vmul.f32 %v5331_v28, %v3939_v25  ;;  %v4045_v54 = vadd.f32 %v4044_v16, %v4010_v8  ;;  %v3940_v35 = vmul.f32 %v5333_v18, %v6630_v46  ;;  %v3869_v8 = vpop.permute.xlu1 %3868 }
 0x209   : > { %4794 = vst [vmem:[%s6644_s28 + $0x28] sm:$0xff] %v4728_v55   ;;  %v4723_v10 = vpack.c.bf16 %v5333_v18, %v5331_v28  ;;  %v4014_v21 = vmul.f32 %v5332_v29, %v3942_v5 }
 0x20a   : > { %v4046_v3 = vadd.f32 %v4045_v54, %v4011_v59  ;;  %v3975_v37 = vadd.f32 %v3974_v31, %v3940_v35  ;;  %v4012_v44 = vmul.f32 %v5333_v18, %v3940_v35  ;;  %v5298_v4 = vpop.f32.mrb[12].mxu0 }
 0x20b   : > { %4793 = vst [vmem:[%s6644_s28 + $0x20] sm:$0xff] %v4723_v10   ;;  %v5334_v13 = vadd.f32 %v5298_v4, %v6612_v43  ;;  %v3584_v50 = vpop.f32.mrb[13].mxu0 }
 0x20c   : > { %v3976_v51 = vadd.f32 %v3975_v37, %v3941_v39  ;;  %v4047_v17 = vadd.f32 %v4046_v3, %v4012_v44  ;;  %v5335_v36 = vadd.f32 %v3584_v50, %v6614_v40  ;;  %v5299_v46 = vpop.f32.mrb[14].mxu0 }
 0x20d   : > { %v5336_v47 = vadd.f32 %v5299_v46, %v6616_v38  ;;  %v3587_v49 = vpop.f32.mrb[15].mxu0  ;;  %v3945_v52 = vmul.f32 %v5334_v13, %v6647_v48 }
 0x20e   : > { %v4048_v30 = vadd.f32 %v4047_v17, %v4013_v1  ;;  %v3943_v43 = vmul.f32 %v5335_v36, %v6637_v62  ;;  %v3977_v27 = vadd.f32 %v3976_v51, %v3942_v5  ;;  %v5337_v20 = vadd.f32 %v3587_v49, %v6618_v45  ;;  %v3864_v62 = vpop.permute.xlu0 %3863  ;;  %v3879_v17 = vpop.permute.xlu1 %3878 }
 0x20f   : > { %v5154_v63 = vpop.f32.mrb[20].mxu1  ;;  %v4738_v40 = vpack.c.bf16 %v5336_v47, %v5334_v13  ;;  %v3946_v7 = vmul.f32 %v5336_v47, %v6650_v56  ;;  %v4017_v29 = vmul.f32 %v5334_v13, %v3945_v52 }
 0x210   : > { %v2102_v57 = vpop.f32.mrb[21].mxu1  ;;  %v3978_v6 = vadd.f32 %v3977_v27, %v3943_v43  ;;  %v4015_v15 = vmul.f32 %v5335_v36, %v3943_v43  ;;  %v4049_v38 = vadd.f32 %v4048_v30, %v4014_v21  ;;  %v3944_v22 = vmul.f32 %v5337_v20, %v6639_v11 }
 0x211   : > { %v5155_v9 = vpop.f32.mrb[22].mxu1  ;;  %4796 = vst [vmem:[%s6644_s28 + $0x38] sm:$0xff] %v4738_v40   ;;  %v4733_v61 = vpack.c.bf16 %v5337_v20, %v5335_v36  ;;  %v4018_v24 = vmul.f32 %v5336_v47, %v3946_v7 }
 0x212   : > { %v2105_v42 = vpop.f32.mrb[23].mxu1  ;;  %v4050_v53 = vadd.f32 %v4049_v38, %v4015_v15  ;;  %v3979_v26 = vadd.f32 %v3978_v6, %v3944_v22  ;;  %v4016_v45 = vmul.f32 %v5337_v20, %v3944_v22  ;;  %v5302_v28 = vpop.f32.mrb[16].mxu0 }
 0x213   : > { %4795 = vst [vmem:[%s6644_s28 + $0x30] sm:$0xff] %v4733_v61   ;;  %v5338_v48 = vadd.f32 %v5302_v28, %v6620_v23  ;;  %v3600_v2 = vpop.f32.mrb[17].mxu0 }
 0x214   : > { %v3980_v58 = vadd.f32 %v3979_v26, %v3945_v52  ;;  %v4051_v16 = vadd.f32 %v4050_v53, %v4016_v45  ;;  %v5339_v11 = vadd.f32 %v3600_v2, %v6622_v0  ;;  %v5303_v25 = vpop.f32.mrb[18].mxu0  ;;  %v3874_v0 = vpop.permute.xlu0 %3873 }
 0x215   : > { %v5340_v56 = vadd.f32 %v5303_v25, %v6624_v12  ;;  %v3603_v18 = vpop.f32.mrb[19].mxu0  ;;  %v3949_v35 = vmul.f32 %v5338_v48, %v6662_v34  ;;  %v3889_v45 = vpop.permute.xlu1 %3888 }
 0x216   : > { %v4052_v55 = vadd.f32 %v4051_v16, %v4017_v29  ;;  %v3947_v31 = vmul.f32 %v5339_v11, %v6653_v60  ;;  %v3981_v59 = vadd.f32 %v3980_v58, %v3946_v7  ;;  %v5341_v23 = vadd.f32 %v3603_v18, %v6628_v14 }
 0x217   : > { %v5158_v39 = vpop.f32.mrb[24].mxu1  ;;  %v4748_v5 = vpack.c.bf16 %v5340_v56, %v5338_v48  ;;  %v3950_v13 = vmul.f32 %v5340_v56, %v6667_v19  ;;  %v4021_v46 = vmul.f32 %v5338_v48, %v3949_v35 }
 0x218   : > { %v2118_v54 = vpop.f32.mrb[25].mxu1  ;;  %v3982_v3 = vadd.f32 %v3981_v59, %v3947_v31  ;;  %v4019_v37 = vmul.f32 %v5339_v11, %v3947_v31  ;;  %v4053_v44 = vadd.f32 %v4052_v55, %v4018_v24  ;;  %v3948_v12 = vmul.f32 %v5341_v23, %v6656_v33  ;;  %v3884_v19 = vpop.permute.xlu0 %3883 }
 0x219   : > { %v5159_v10 = vpop.f32.mrb[26].mxu1  ;;  %4798 = vst [vmem:[%s6644_s28 + $0x48] sm:$0xff] %v4748_v5   ;;  %v4743_v60 = vpack.c.bf16 %v5341_v23, %v5339_v11  ;;  %v4022_v43 = vmul.f32 %v5340_v56, %v3950_v13 }
 0x21a   : > { %v2121_v4 = vpop.f32.mrb[27].mxu1  ;;  %v4054_v50 = vadd.f32 %v4053_v44, %v4019_v37  ;;  %v3983_v1 = vadd.f32 %v3982_v3, %v3948_v12  ;;  %v4020_v14 = vmul.f32 %v5341_v23, %v3948_v12  ;;  %v5306_v51 = vpop.f32.mrb[20].mxu0 }
 0x21b   : > { %4797 = vst [vmem:[%s6644_s28 + $0x40] sm:$0xff] %v4743_v60   ;;  %v5342_v34 = vadd.f32 %v5306_v51, %v5154_v63  ;;  %v3616_v36 = vpop.f32.mrb[21].mxu0  ;;  %v3899_v37 = vpop.permute.xlu1 %3898 }
 0x21c   : > { %v3984_v21 = vadd.f32 %v3983_v1, %v3949_v35  ;;  %v4055_v47 = vadd.f32 %v4054_v50, %v4020_v14  ;;  %v5343_v49 = vadd.f32 %v3616_v36, %v2102_v57  ;;  %v5307_v30 = vpop.f32.mrb[22].mxu0  ;;  %v3894_v16 = vpop.permute.xlu0 %3893 }
 0x21d   : > { %v5344_v33 = vadd.f32 %v5307_v30, %v5155_v9  ;;  %v3619_v27 = vpop.f32.mrb[23].mxu0  ;;  %v3953_v22 = vmul.f32 %v5342_v34, %v3864_v62 }
 0x21e   : > { %v4056_v52 = vadd.f32 %v4055_v47, %v4021_v46  ;;  %v3951_v40 = vmul.f32 %v5343_v49, %v6674_v41  ;;  %v3985_v6 = vadd.f32 %v3984_v21, %v3950_v13  ;;  %v5345_v15 = vadd.f32 %v3619_v27, %v2105_v42 }
 0x21f   : > { %v5162_v20 = vpop.f32.mrb[28].mxu1  ;;  %v4758_v63 = vpack.c.bf16 %v5344_v33, %v5342_v34  ;;  %v3954_v28 = vmul.f32 %v5344_v33, %v3869_v8  ;;  %v4025_v11 = vmul.f32 %v5342_v34, %v3953_v22  ;;  %v3909_v27 = vpop.permute.xlu1 %3908 }
 0x220   : > { %v2134_v38 = vpop.f32.mrb[29].mxu1  ;;  %v3986_v61 = vadd.f32 %v3985_v6, %v3951_v40  ;;  %v4023_v53 = vmul.f32 %v5343_v49, %v3951_v40  ;;  %v4057_v57 = vadd.f32 %v4056_v52, %v4022_v43  ;;  %v3952_v26 = vmul.f32 %v5345_v15, %v6678_v32  ;;  %v3904_v51 = vpop.permute.xlu0 %3903 }
 0x221   : > { %v5163_v7 = vpop.f32.mrb[30].mxu1  ;;  %4800 = vst [vmem:[%s6644_s28 + $0x58] sm:$0xff] %v4758_v63   ;;  %v4753_v48 = vpack.c.bf16 %v5345_v15, %v5343_v49  ;;  %v4026_v55 = vmul.f32 %v5344_v33, %v3954_v28 }
 0x222   : > { %v2137_v9 = vpop.f32.mrb[31].mxu1  ;;  %v4058_v2 = vadd.f32 %v4057_v57, %v4023_v53  ;;  %v3987_v29 = vadd.f32 %v3986_v61, %v3952_v26  ;;  %v4024_v41 = vmul.f32 %v5345_v15, %v3952_v26  ;;  %v5310_v58 = vpop.f32.mrb[24].mxu0 }
 0x223   : > { %4799 = vst [vmem:[%s6644_s28 + $0x50] sm:$0xff] %v4753_v48   ;;  %v5346_v42 = vadd.f32 %v5310_v58, %v5158_v39  ;;  %v3632_v62 = vpop.f32.mrb[25].mxu0 }
 0x224   : > { %v3988_v25 = vadd.f32 %v3987_v29, %v3953_v22  ;;  %v4059_v24 = vadd.f32 %v4058_v2, %v4024_v41  ;;  %v5347_v56 = vadd.f32 %v3632_v62, %v2118_v54  ;;  %v5311_v18 = vpop.f32.mrb[26].mxu0  ;;  %v3914_v53 = vpop.permute.xlu0 %3913 }
 0x225   : > { %v5348_v32 = vadd.f32 %v5311_v18, %v5159_v10  ;;  %v3635_v31 = vpop.f32.mrb[27].mxu0  ;;  %v3957_v44 = vmul.f32 %v5346_v42, %v3884_v19  ;;  %v3919_v41 = vpop.permute.xlu1 %3918 }
 0x226   : > { %v4060_v8 = vadd.f32 %v4059_v24, %v4025_v11  ;;  %v3955_v23 = vmul.f32 %v5347_v56, %v3874_v0  ;;  %v3989_v35 = vadd.f32 %v3988_v25, %v3954_v28  ;;  %v5349_v5 = vadd.f32 %v3635_v31, %v2121_v4 }
 0x227   : > { %v5166_v59 = vpop.f32.mrb[32].mxu1  ;;  %v4768_v39 = vpack.c.bf16 %v5348_v32, %v5346_v42  ;;  %v3958_v14 = vmul.f32 %v5348_v32, %v3889_v45  ;;  %v4029_v47 = vmul.f32 %v5346_v42, %v3957_v44 }
 0x228   : > { %v2150_v3 = vpop.f32.mrb[33].mxu1  ;;  %v3990_v13 = vadd.f32 %v3989_v35, %v3955_v23  ;;  %v4027_v60 = vmul.f32 %v5347_v56, %v3955_v23  ;;  %v4061_v50 = vadd.f32 %v4060_v8, %v4026_v55  ;;  %v3956_v54 = vmul.f32 %v5349_v5, %v3879_v17  ;;  %v3924_v55 = vpop.permute.xlu0 %3923 }
 0x229   : > { %v5167_v12 = vpop.f32.mrb[34].mxu1  ;;  %4802 = vst [vmem:[%s6644_s28 + $0x68] sm:$0xff] %v4768_v39   ;;  %v4763_v10 = vpack.c.bf16 %v5349_v5, %v5347_v56  ;;  %v4030_v17 = vmul.f32 %v5348_v32, %v3958_v14 }
 0x22a   : > { %v2153_v1 = vpop.f32.mrb[35].mxu1  ;;  %v4062_v34 = vadd.f32 %v4061_v50, %v4027_v60  ;;  %v3991_v36 = vadd.f32 %v3990_v13, %v3956_v54  ;;  %v4028_v0 = vmul.f32 %v5349_v5, %v3956_v54  ;;  %v5314_v46 = vpop.f32.mrb[28].mxu0 }
 0x22b   : > { %4801 = vst [vmem:[%s6644_s28 + $0x60] sm:$0xff] %v4763_v10   ;;  %v5350_v4 = vadd.f32 %v5314_v46, %v5162_v20  ;;  %v3648_v21 = vpop.f32.mrb[29].mxu0  ;;  %v3929_v13 = vpop.permute.xlu1 %3928 }
 0x22c   : > { %v3992_v49 = vadd.f32 %v3991_v36, %v3957_v44  ;;  %v4063_v30 = vadd.f32 %v4062_v34, %v4028_v0  ;;  %v5351_v43 = vadd.f32 %v3648_v21, %v2134_v38  ;;  %v5315_v33 = vpop.f32.mrb[30].mxu0 }
 0x22d   : > { %v5352_v19 = vadd.f32 %v5315_v33, %v5163_v7  ;;  %v3651_v52 = vpop.f32.mrb[31].mxu0  ;;  %v3961_v63 = vmul.f32 %v5350_v4, %v3904_v51 }
 0x22e   : > { %v4064_v40 = vadd.f32 %v4063_v30, %v4029_v47  ;;  %v3959_v6 = vmul.f32 %v5351_v43, %v3894_v16  ;;  %v3993_v15 = vadd.f32 %v3992_v49, %v3958_v14  ;;  %v5353_v22 = vadd.f32 %v3651_v52, %v2137_v9 }
 0x22f   : > { %v4778_v61 = vpack.c.bf16 %v5352_v19, %v5350_v4  ;;  %v3962_v28 = vmul.f32 %v5352_v19, %v3909_v27  ;;  %v4033_v9 = vmul.f32 %v5350_v4, %v3961_v63 }
 0x230   : > { %v3994_v20 = vadd.f32 %v3993_v15, %v3959_v6  ;;  %v4031_v57 = vmul.f32 %v5351_v43, %v3959_v6  ;;  %v4065_v26 = vadd.f32 %v4064_v40, %v4030_v17  ;;  %v3960_v45 = vmul.f32 %v5353_v22, %v3899_v37 }
 0x231   : > { %4804 = vst [vmem:[%s6644_s28 + $0x78] sm:$0xff] %v4778_v61   ;;  %v4773_v38 = vpack.c.bf16 %v5353_v22, %v5351_v43  ;;  %v4034_v24 = vmul.f32 %v5352_v19, %v3962_v28 }
 0x232   : > { %v4066_v48 = vadd.f32 %v4065_v26, %v4031_v57  ;;  %v3995_v2 = vadd.f32 %v3994_v20, %v3960_v45  ;;  %v4032_v29 = vmul.f32 %v5353_v22, %v3960_v45  ;;  %v5318_v7 = vpop.f32.mrb[32].mxu0 }
 0x233   : > { %4803 = vst [vmem:[%s6644_s28 + $0x70] sm:$0xff] %v4773_v38   ;;  %v5354_v58 = vadd.f32 %v5318_v7, %v5166_v59  ;;  %v3664_v42 = vpop.f32.mrb[33].mxu0 }
 0x234   : > { %v3996_v62 = vadd.f32 %v3995_v2, %v3961_v63  ;;  %v4067_v16 = vadd.f32 %v4066_v48, %v4032_v29  ;;  %v5355_v11 = vadd.f32 %v3664_v42, %v2150_v3  ;;  %v5319_v25 = vpop.f32.mrb[34].mxu0 }
 0x235   : > { %v5356_v56 = vadd.f32 %v5319_v25, %v5167_v12  ;;  %v3667_v18 = vpop.f32.mrb[35].mxu0  ;;  %v3965_v35 = vmul.f32 %v5354_v58, %v3924_v55 }
 0x236   : > { %v4068_v32 = vadd.f32 %v4067_v16, %v4033_v9  ;;  %v3963_v31 = vmul.f32 %v5355_v11, %v3914_v53  ;;  %v3997_v8 = vadd.f32 %v3996_v62, %v3962_v28  ;;  %v5357_v23 = vadd.f32 %v3667_v18, %v2153_v1 }
 0x237   : > { %v4788_v5 = vpack.c.bf16 %v5356_v56, %v5354_v58  ;;  %v3966_v50 = vmul.f32 %v5356_v56, %v3929_v13  ;;  %v4037_v14 = vmul.f32 %v5354_v58, %v3965_v35 }
 0x238   : > { %v3998_v59 = vadd.f32 %v3997_v8, %v3963_v31  ;;  %v4035_v37 = vmul.f32 %v5355_v11, %v3963_v31  ;;  %v4069_v44 = vadd.f32 %v4068_v32, %v4034_v24  ;;  %v3964_v39 = vmul.f32 %v5357_v23, %v3919_v41 }
 0x239   : > { %4806 = vst [vmem:[%s6644_s28 + $0x88] sm:$0xff] %v4788_v5   ;;  %v4783_v3 = vpack.c.bf16 %v5357_v23, %v5355_v11  ;;  %v4038_v1 = vmul.f32 %v5356_v56, %v3966_v50 }
 0x23a   : > { %v4070_v60 = vadd.f32 %v4069_v44, %v4035_v37  ;;  %v3999_v12 = vadd.f32 %v3998_v59, %v3964_v39  ;;  %v4036_v54 = vmul.f32 %v5357_v23, %v3964_v39 }
 0x23b   : > { %4805 = vst [vmem:[%s6644_s28 + $0x80] sm:$0xff] %v4783_v3  }
 0x23c   : > { %v4000_v10 = vadd.f32 %v3999_v12, %v3965_v35  ;;  %v4071_v51 = vadd.f32 %v4070_v60, %v4036_v54 }
 0x23e   : > { %v4001_v34 = vadd.f32 %v4000_v10, %v3966_v50  ;;  %v4072_v36 = vadd.f32 %v4071_v51, %v4037_v14 }
 0x240   : > { %4002 = vst [vmem:[%s261_s7] sm:$0xff] %v4001_v34  ;;  %v4073_v0 = vadd.f32 %v4072_v36, %v4038_v1 }
 0x242   : > { %4074 = vst [vmem:[%s265_s10] sm:$0xff] %v4073_v0 }
 0x243 PF: > { %s16_s18 = sadd.s32 1, %s5713_s18  }
 0x244   : > { %p13_p4 = scmp.ge.s32.totalorder %s16_s18, 4  }
 0x246   :  { %15 = sbr.rel (!%p13_p4) target bundleno = 1 (0x1), region = 97 }

</bundles_post_ra>
